<compile_context>
chip_gen: v6e
topology: v6e:2x2x1
jax: 0.10.0
libtpu: 0.0.40
codegen_flags: <defaults>
</compile_context>

<pallas_src>
import functools

import jax
import jax.numpy as jnp
from jax import lax
from jax.experimental import pallas as pl
from jax.experimental.pallas import tpu as pltpu

ALPHA = 0.2          # LeakyReLU negative slope
BN_EPS = 1e-5        # nn.BatchNorm3d default eps
VMEM_LIMIT = 48 * 1024 * 1024   # explicit scoped-VMEM budget (fits v7x's 64 MiB)


def _round_up(a, b):
    return (a + b - 1) // b * b


# ----------------------------------------------------------------------------
# Kernel A: K-tiled im2col matmul (bf16 x bf16 -> f32 acc) + per-M-tile BN
# partial statistics.  Grid = (M_tiles [parallel], K_tiles [arbitrary]).
# ----------------------------------------------------------------------------
def _conv_matmul_stats_kernel(p_ref, w_ref, y_ref, ps_ref, acc_ref):
    k = pl.program_id(1)

    @pl.when(k == 0)
    def _init():
        acc_ref[...] = jnp.zeros_like(acc_ref)

    acc_ref[...] += jnp.dot(p_ref[...], w_ref[...],
                            preferred_element_type=jnp.float32)

    @pl.when(k == pl.num_programs(1) - 1)
    def _finalize():
        acc = acc_ref[...]
        y_ref[...] = acc.astype(y_ref.dtype)                 # bf16 intermediate
        s1 = jnp.sum(acc, axis=0, keepdims=True)             # (1, Cout_p)
        s2 = jnp.sum(acc * acc, axis=0, keepdims=True)       # (1, Cout_p)
        ps_ref[...] = jnp.concatenate([s1, s2], axis=0).reshape(ps_ref.shape)


# ----------------------------------------------------------------------------
# Stats finalize: reduce per-tile partials, fold BN into (scale, shift).
# scale = gamma * rsqrt(var + eps), shift = beta - mean * scale.
# ----------------------------------------------------------------------------
def _stats_finalize_kernel(ps_ref, g_ref, b_ref, ss_ref, *, m_total):
    s = jnp.sum(ps_ref[...], axis=0)                         # (2, Cout_p)
    inv_m = 1.0 / m_total
    mean = s[0:1, :] * inv_m
    # clamp: E[x^2]-E[x]^2 can go slightly negative in f32
    var = jnp.maximum(s[1:2, :] * inv_m - mean * mean, 0.0)
    scale = g_ref[...] * lax.rsqrt(var + BN_EPS)
    shift = b_ref[...] - mean * scale
    ss_ref[...] = jnp.concatenate([scale, shift], axis=0)


# ----------------------------------------------------------------------------
# Kernel B: pure VPU fma pass  z = y*scale + shift  (+ LeakyReLU).
# ----------------------------------------------------------------------------
def _bn_act_kernel(y_ref, ss_ref, o_ref, *, activation):
    ss = ss_ref[...]
    z = y_ref[...].astype(jnp.float32) * ss[0:1, :] + ss[1:2, :]
    if activation:
        z = jnp.where(z >= 0, z, ALPHA * z)
    o_ref[...] = z


# ----------------------------------------------------------------------------
# Python wrapper: padding / im2col / reshapes are glue, compute is in Pallas.
# ----------------------------------------------------------------------------
def conv3d_bn(x, weight, gamma, beta, *, strides=1, padding=1, activation=True):
    def _triple(v):
        return (v, v, v) if isinstance(v, int) else tuple(v)

    sD, sH, sW = _triple(strides)
    pD, pH, pW = _triple(padding)

    N, Cin, D, H, W = x.shape
    Cout, _, kD, kH, kW = weight.shape

    Do = (D + 2 * pD - kD) // sD + 1
    Ho = (H + 2 * pH - kH) // sH + 1
    Wo = (W + 2 * pW - kW) // sW + 1

    M = N * Do * Ho * Wo
    K = kD * kH * kW * Cin

    # ---- tiling ---------------------------------------------------------
    Cout_p = _round_up(Cout, 128)          # lane-dense output channels
    K_p = _round_up(K, 128)
    tk = 128
    for cand in (512, 256, 128):
        if K_p % cand == 0:
            tk = cand
            break
    if M >= 1024 and M % 1024 == 0:
        tm = 1024
    elif M >= 512:
        tm = 512
    else:
        tm = _round_up(M, 8)
    M_p = _round_up(M, tm)
    Mt = M_p // tm
    Kt = K_p // tk

    # ---- channels-last, spatial padding, bf16, im2col -------------------
    x_cl = jnp.transpose(x, (0, 2, 3, 4, 1)).astype(jnp.bfloat16)
    xp = jnp.pad(x_cl, ((0, 0), (pD, pD), (pH, pH), (pW, pW), (0, 0)))

    cols = []
    for kd in range(kD):
        for kh in range(kH):
            for kw in range(kW):
                cols.append(xp[:, kd:kd + Do * sD:sD,
                               kh:kh + Ho * sH:sH,
                               kw:kw + Wo * sW:sW, :])
    patches = jnp.stack(cols, axis=-2).reshape(M, K)
    patches = jnp.pad(patches, ((0, M_p - M), (0, K_p - K)))        # zeros: inert

    # weight (Cout, Cin, kD, kH, kW) -> (K, Cout) -> padded bf16
    w2 = jnp.transpose(weight, (2, 3, 4, 1, 0)).reshape(K, Cout)
    w2 = jnp.pad(w2, ((0, K_p - K), (0, Cout_p - Cout))).astype(jnp.bfloat16)

    gamma2 = jnp.pad(gamma.astype(jnp.float32), (0, Cout_p - Cout)).reshape(1, Cout_p)
    beta2 = jnp.pad(beta.astype(jnp.float32), (0, Cout_p - Cout)).reshape(1, Cout_p)

    # ---- kernel A: conv matmul + per-tile stats --------------------------
    conv_out, partial_stats = pl.pallas_call(
        _conv_matmul_stats_kernel,
        out_shape=(jax.ShapeDtypeStruct((M_p, Cout_p), jnp.bfloat16),
                   jax.ShapeDtypeStruct((Mt, 2, Cout_p), jnp.float32)),
        grid_spec=pltpu.PrefetchScalarGridSpec(
            num_scalar_prefetch=0,
            grid=(Mt, Kt),
            in_specs=[pl.BlockSpec((tm, tk), lambda i, k: (i, k)),
                      pl.BlockSpec((tk, Cout_p), lambda i, k: (k, 0))],
            out_specs=[pl.BlockSpec((tm, Cout_p), lambda i, k: (i, 0)),
                       pl.BlockSpec((1, 2, Cout_p), lambda i, k: (i, 0, 0))],
            scratch_shapes=[pltpu.VMEM((tm, Cout_p), jnp.float32)]),
        compiler_params=pltpu.CompilerParams(
            dimension_semantics=("parallel", "arbitrary"),
            vmem_limit_bytes=VMEM_LIMIT),
    )(patches, w2)

    # ---- finalize stats -> (scale, shift) --------------------------------
    scale_shift = pl.pallas_call(
        functools.partial(_stats_finalize_kernel, m_total=float(M)),
        out_shape=jax.ShapeDtypeStruct((2, Cout_p), jnp.float32),
        grid_spec=pltpu.PrefetchScalarGridSpec(
            num_scalar_prefetch=0,
            grid=(1,),
            in_specs=[pl.BlockSpec((Mt, 2, Cout_p), lambda i: (0, 0, 0)),
                      pl.BlockSpec((1, Cout_p), lambda i: (0, 0)),
                      pl.BlockSpec((1, Cout_p), lambda i: (0, 0))],
            out_specs=pl.BlockSpec((2, Cout_p), lambda i: (0, 0))),
        compiler_params=pltpu.CompilerParams(
            dimension_semantics=("arbitrary",),
            vmem_limit_bytes=VMEM_LIMIT),
    )(partial_stats, gamma2, beta2)

    # ---- kernel B: y*scale + shift (+ LeakyReLU) --------------------------
    out_flat = pl.pallas_call(
        functools.partial(_bn_act_kernel, activation=bool(activation)),
        out_shape=jax.ShapeDtypeStruct((M_p, Cout_p), jnp.float32),
        grid_spec=pltpu.PrefetchScalarGridSpec(
            num_scalar_prefetch=0,
            grid=(Mt,),
            in_specs=[pl.BlockSpec((tm, Cout_p), lambda i: (i, 0)),
                      pl.BlockSpec((2, Cout_p), lambda i: (0, 0))],
            out_specs=pl.BlockSpec((tm, Cout_p), lambda i: (i, 0))),
        compiler_params=pltpu.CompilerParams(
            dimension_semantics=("parallel",),
            vmem_limit_bytes=VMEM_LIMIT),
    )(conv_out, scale_shift)

    # strip padding, back to PyTorch NCDHW output layout
    out = out_flat[:M, :Cout].reshape(N, Do, Ho, Wo, Cout)
    return jnp.transpose(out, (0, 4, 1, 2, 3))


# ----------------------------------------------------------------------------
# Pure-JAX f32 reference (correctness check only).
# ----------------------------------------------------------------------------
def _reference(x, weight, gamma, beta, *, strides, padding, activation):
    s = (strides, strides, strides) if isinstance(strides, int) else tuple(strides)
    p = (padding, padding, padding) if isinstance(padding, int) else tuple(padding)
    y = lax.conv_general_dilated(
        x.astype(jnp.float32), weight.astype(jnp.float32),
        window_strides=s, padding=[(p[0], p[0]), (p[1], p[1]), (p[2], p[2])],
        dimension_numbers=("NCDHW", "OIDHW", "NCDHW"))
    mean = jnp.mean(y, axis=(0, 2, 3, 4), keepdims=True)
    var = jnp.var(y, axis=(0, 2, 3, 4), keepdims=True)   # biased, as BN uses
    g = gamma.reshape(1, -1, 1, 1, 1)
    b = beta.reshape(1, -1, 1, 1, 1)
    z = (y - mean) * lax.rsqrt(var + BN_EPS) * g + b
    if activation:
        z = jnp.where(z >= 0, z, ALPHA * z)
    return z


if __name__ == "__main__":
    key = jax.random.PRNGKey(0)
    k_x, k_w, k_g, k_b = jax.random.split(key, 4)

    N, Cin, Cout = 2, 4, 8
    D = H = W = 8
    ksize, strides, padding = 3, 1, 1

    x = jax.random.normal(k_x, (N, Cin, D, H, W), dtype=jnp.float32)
    fan_in = Cin * ksize * ksize * ksize
    weight = jax.random.normal(k_w, (Cout, Cin, ksize, ksize, ksize),
                               dtype=jnp.float32) / jnp.sqrt(float(fan_in))
    gamma = 1.0 + 0.1 * jax.random.normal(k_g, (Cout,), dtype=jnp.float32)
    beta = 0.1 * jax.random.normal(k_b, (Cout,), dtype=jnp.float32)

    out = conv3d_bn(x, weight, gamma, beta,
                    strides=strides, padding=padding, activation=True)
    out = jax.block_until_ready(out)

    ref = _reference(x, weight, gamma, beta,
                     strides=strides, padding=padding, activation=True)
    assert out.shape == ref.shape, (out.shape, ref.shape)
    # bf16 matmul operands / bf16 conv intermediate -> relaxed tolerance vs f32 ref
    max_err = float(jnp.max(jnp.abs(out - ref)))
    assert jnp.allclose(out, ref, atol=5e-2, rtol=5e-2), max_err

    print("KERNEL_OK")
</pallas_src>

<mosaic_0001>
module attributes {stable_mosaic.version = 11 : i64} {
  func.func @_conv_matmul_stats_kernel(%arg0: i32, %arg1: i32, %arg2: memref<1024x128xbf16, #tpu.memory_space<vmem>>, %arg3: memref<128x128xbf16, #tpu.memory_space<vmem>>, %arg4: memref<1024x128xbf16, #tpu.memory_space<vmem>>, %arg5: memref<1x2x128xf32, #tpu.memory_space<vmem>>, %arg6: memref<1024x128xf32, #tpu.memory_space<vmem>>) attributes {dimension_semantics = [#tpu.dimension_semantics<parallel>, #tpu.dimension_semantics<arbitrary>], iteration_bounds = array<i64: 1, 1>, scalar_prefetch = 0 : i64, scratch_operands = 1 : i64, tpu.core_type = #tpu.core_type<tc>, window_params = [{transform_indices = @transform_0, window_bounds = array<i64: 1024, 128>}, {transform_indices = @transform_1, window_bounds = array<i64: 128, 128>}, {transform_indices = @transform_2, window_bounds = array<i64: 1024, 128>}, {transform_indices = @transform_3, window_bounds = array<i64: 1, 2, 128>}]} {
    %c0_i32 = arith.constant 0 : i32
    %0 = arith.cmpi eq, %arg1, %c0_i32 : i32
    %1 = arith.extui %0 : i1 to i32
    %c0_i32_0 = arith.constant 0 : i32
    %2 = arith.cmpi ne, %1, %c0_i32_0 : i32
    scf.if %2 {
      %cst_10 = arith.constant 0.000000e+00 : f32
      %12 = vector.broadcast %cst_10 : f32 to vector<1024x128xf32>
      %c0_11 = arith.constant 0 : index
      %c0_12 = arith.constant 0 : index
      %13 = vector.load %arg6[%c0_11, %c0_12] : memref<1024x128xf32, #tpu.memory_space<vmem>>, vector<1024x128xf32>
      tpu.vector_store %arg6[%c0_11, %c0_12], %12 {strides = array<i32>} : memref<1024x128xf32, #tpu.memory_space<vmem>>, vector<1024x128xf32>,
    } else {
    }
    %c0 = arith.constant 0 : index
    %c0_1 = arith.constant 0 : index
    %3 = vector.load %arg6[%c0, %c0_1] : memref<1024x128xf32, #tpu.memory_space<vmem>>, vector<1024x128xf32>
    %c0_2 = arith.constant 0 : index
    %c0_3 = arith.constant 0 : index
    %4 = vector.load %arg2[%c0_2, %c0_3] : memref<1024x128xbf16, #tpu.memory_space<vmem>>, vector<1024x128xbf16>
    %c0_4 = arith.constant 0 : index
    %c0_5 = arith.constant 0 : index
    %5 = vector.load %arg3[%c0_4, %c0_5] : memref<128x128xbf16, #tpu.memory_space<vmem>>, vector<128x128xbf16>
    %cst = arith.constant dense<0.000000e+00> : vector<1024x128xf32>
    %6 = tpu.matmul %4, %5, %cst {dimension_numbers = #tpu.dot_dimension_numbers<[1], [0], [0], [1], [0, 0, 1, 1], [], []>} : vector<1024x128xbf16>, vector<128x128xbf16>, vector<1024x128xf32> -> vector<1024x128xf32>
    %7 = arith.addf %3, %6 : vector<1024x128xf32>
    %c0_6 = arith.constant 0 : index
    %c0_7 = arith.constant 0 : index
    %8 = vector.load %arg6[%c0_6, %c0_7] : memref<1024x128xf32, #tpu.memory_space<vmem>>, vector<1024x128xf32>
    tpu.vector_store %arg6[%c0_6, %c0_7], %7 {strides = array<i32>} : memref<1024x128xf32, #tpu.memory_space<vmem>>, vector<1024x128xf32>,
    %c0_i32_8 = arith.constant 0 : i32
    %9 = arith.cmpi eq, %arg1, %c0_i32_8 : i32
    %10 = arith.extui %9 : i1 to i32
    %c0_i32_9 = arith.constant 0 : i32
    %11 = arith.cmpi ne, %10, %c0_i32_9 : i32
    scf.if %11 {
      %c0_10 = arith.constant 0 : index
      %c0_11 = arith.constant 0 : index
      %12 = vector.load %arg6[%c0_10, %c0_11] : memref<1024x128xf32, #tpu.memory_space<vmem>>, vector<1024x128xf32>
      %13 = arith.truncf %12 : vector<1024x128xf32> to vector<1024x128xbf16>
      %c0_12 = arith.constant 0 : index
      %c0_13 = arith.constant 0 : index
      %14 = vector.load %arg4[%c0_12, %c0_13] : memref<1024x128xbf16, #tpu.memory_space<vmem>>, vector<1024x128xbf16>
      tpu.vector_store %arg4[%c0_12, %c0_13], %13 {strides = array<i32>} : memref<1024x128xbf16, #tpu.memory_space<vmem>>, vector<1024x128xbf16>,
      %cst_14 = arith.constant dense<0.000000e+00> : vector<128xf32>
      %15 = vector.multi_reduction <add>, %12, %cst_14 [0] : vector<1024x128xf32> to vector<128xf32>
      %16 = vector.shape_cast %15 : vector<128xf32> to vector<1x128xf32>
      %17 = arith.mulf %12, %12 : vector<1024x128xf32>
      %cst_15 = arith.constant dense<0.000000e+00> : vector<128xf32>
      %18 = vector.multi_reduction <add>, %17, %cst_15 [0] : vector<1024x128xf32> to vector<128xf32>
      %19 = vector.shape_cast %18 : vector<128xf32> to vector<1x128xf32>
      %20 = tpu.concatenate %16, %19 in 0 : vector<1x128xf32>, vector<1x128xf32> -> vector<2x128xf32>
      %21 = vector.shape_cast %20 : vector<2x128xf32> to vector<1x2x128xf32>
      %c0_16 = arith.constant 0 : index
      %c0_17 = arith.constant 0 : index
      %c0_18 = arith.constant 0 : index
      %22 = vector.load %arg5[%c0_16, %c0_17, %c0_18] : memref<1x2x128xf32, #tpu.memory_space<vmem>>, vector<1x2x128xf32>
      tpu.vector_store %arg5[%c0_16, %c0_17, %c0_18], %21 {strides = array<i32>} : memref<1x2x128xf32, #tpu.memory_space<vmem>>, vector<1x2x128xf32>,
    } else {
    }
    return
  }
  func.func @transform_0(%arg0: i32, %arg1: i32) -> (i32, i32) {
    %c0_i32 = arith.constant 0 : i32
    return %arg0, %arg1 : i32, i32
  }
  func.func @transform_1(%arg0: i32, %arg1: i32) -> (i32, i32) {
    %c0_i32 = arith.constant 0 : i32
    %c0_i32_0 = arith.constant 0 : i32
    return %arg1, %c0_i32 : i32, i32
  }
  func.func @transform_2(%arg0: i32, %arg1: i32) -> (i32, i32) {
    %c0_i32 = arith.constant 0 : i32
    %c0_i32_0 = arith.constant 0 : i32
    return %arg0, %c0_i32 : i32, i32
  }
  func.func @transform_3(%arg0: i32, %arg1: i32) -> (i32, i32, i32) {
    %c0_i32 = arith.constant 0 : i32
    %c0_i32_0 = arith.constant 0 : i32
    %c0_i32_1 = arith.constant 0 : i32
    return %arg0, %c0_i32, %c0_i32_0 : i32, i32, i32
  }
}

</mosaic_0001>

<bundles_post_ra>
// kernel: tpu_custom_call.1
= control target key start
LH: loop header
LB: loop body
LE: loop exit
PB: predicated region body
PF: predicated region fallthrough
CT: control target
= control target key end

     0   :  { %9 = vsyncpa [#allocation4], 0  ;;  %s4421_s0 = inlined_call_operand.hbm [shape: bf16[1024,128], index: 0, kind: input, shape index: {}]   ;;  %s4422_s1 = inlined_call_operand.hbm [shape: bf16[128,128], index: 1, kind: input, shape index: {}]   ;;  %s4423_s2 = inlined_call_operand.hbm [shape: bf16[1024,128], index: 2, kind: output, shape index: {0}]   ;;  %s4424_s3 = inlined_call_operand.hbm [shape: f32[1,2,128], index: 3, kind: output, shape index: {1}]  }
   0x1   :  { %10 = vsyncpa [#allocation7], 0 }
   0x2   :  { %11 = vsyncpa [#allocation5], 0 }
   0x3   :  { %12 = vsyncpa [#allocation10], 0  ;;  %s3990_s12 = smov [#allocation3]  }
   0x4   :  { %s18_s13 = sshll.u32 %s3990_s12, 4  ;;  %s19_s13 = int_to_ptr.vmem [resolvable:$true] %s18_s13 }
   0x5   :  { %s3910_s14 = scalar_lea.vmem %s19_s13, 8192  ;;  %p3915_p1 = scmp.lt.s32.totalorder %s19_s13, %s19_s13 }
   0x6   :  { %p3911_p0 = scmp.ne.s32.totalorder %s19_s13, %s3910_s14  ;;  %p3916_p2 = scmp.lt.s32.totalorder %s3910_s14, %s3910_s14 }
   0x8   :  { %p3917_p3 = por %p3916_p2, %p3915_p1 }
   0xa   :  { %p3918_p4 = pnand %p3917_p3, %p3911_p0 }
   0xc   :  { %3921 = shalt.err (!%p3918_p4)
}
   0xd   :  { %s3991_s15 = smov 64   ;;  %s3992_s16 = smov 4  }
   0xe   :  { %24 = dma.hbm_to_vmem [thread:$0]  %s4421_s0, 8192, %s19_s13, [#allocation4], %s3991_s15, %s3991_s15, %s3992_s16  }
   0xf   :  { %s3993_s19 = smov [#allocation6]  }
  0x10   :  { %s30_s20 = sshll.u32 %s3993_s19, 4  ;;  %s31_s20 = int_to_ptr.vmem [resolvable:$true] %s30_s20 }
  0x11   :  { %s3930_s21 = scalar_lea.vmem %s31_s20, 1024  ;;  %p3935_p6 = scmp.lt.s32.totalorder %s31_s20, %s31_s20 }
  0x12   :  { %p3931_p5 = scmp.ne.s32.totalorder %s31_s20, %s3930_s21  ;;  %p3936_p7 = scmp.lt.s32.totalorder %s3930_s21, %s3930_s21 }
  0x14   :  { %p3937_p8 = por %p3936_p7, %p3935_p6 }
  0x16   :  { %p3938_p9 = pnand %p3937_p8, %p3931_p5 }
  0x18   :  { %3941 = shalt.err (!%p3938_p9)
}
  0x19   :  { %36 = dma.hbm_to_vmem [thread:$0]  %s4422_s1, 1024, %s31_s20, [#allocation7], %s3991_s15, %s3991_s15, %s3992_s16  }
  0x1a   :  { %3982 = dma.done.wait [#allocation4], 8192  }
  0x1b   :  { %3983 = vsyncadd [#allocation4], 4294959104 }
  0x1c   :  { %3984 = dma.done.wait [#allocation7], 1024  }
  0x1d   :  { %3985 = vsyncadd [#allocation7], 4294966272  ;;  %v3830_v0 = vld [vmem:[#allocation6 + $0x38] sm:$0xff]   ;;  %v3831_v1 = vld [vmem:[#allocation6 + $0x30] sm:$0xff]   ;;  %s3994_s0 = smov [#allocation8]  }
  0x1e   :  { %3664 = vmatprep.subr.bf16.mxu0 %v3830_v0  ;;  %3808 = vmatprep.subr.bf16.mxu1 %v3830_v0  ;;  %v3832_v2 = vld [vmem:[#allocation6 + $0x28] sm:$0xff]   ;;  %v3833_v3 = vld [vmem:[#allocation6 + $0x20] sm:$0xff]   ;;  %v3834_v5 = vld [vmem:[#allocation6 + $0x18] sm:$0xff]   ;;  %s2854_s1 = sshll.u32 %s3994_s0, 4  ;;  %s2855_s1 = int_to_ptr.vmem [resolvable:$true] %s2854_s1 }
  0x1f   :  { %3665 = vmatpush3.bf16.msra.mxu0 %v3830_v0  ;;  %3816 = vmatpush3.bf16.msra.mxu1 %v3830_v0  ;;  %v3838_v4 = vld [vmem:[#allocation3] sm:$0xff]   ;;  %v3835_v6 = vld [vmem:[#allocation6 + $0x10] sm:$0xff]   ;;  %v3836_v7 = vld [vmem:[#allocation6 + $0x8] sm:$0xff]   ;;  %s3942_s24 = scalar_lea.vmem %s2855_s1, 8192  ;;  %p3947_p11 = scmp.lt.s32.totalorder %s2855_s1, %s2855_s1 }
  0x20   :  { %3666 = vmatprep.subr.bf16.mxu0 %v3831_v1  ;;  %3809 = vmatprep.subr.bf16.mxu1 %v3831_v1  ;;  %v3837_v8 = vld [vmem:[#allocation6] sm:$0xff]   ;;  %v3839_v9 = vld [vmem:[#allocation3 + $0x8] sm:$0xff]   ;;  %v3840_v10 = vld [vmem:[#allocation3 + $0x10] sm:$0xff]   ;;  %p3943_p10 = scmp.ne.s32.totalorder %s2855_s1, %s3942_s24  ;;  %p3948_p12 = scmp.lt.s32.totalorder %s3942_s24, %s3942_s24 }
  0x21   :  { %3680 = vmatprep.mubr.bf16.mxu0 %v3838_v4  ;;  %v3841_v11 = vld [vmem:[#allocation3 + $0x18] sm:$0xff]   ;;  %v3842_v12 = vld [vmem:[#allocation3 + $0x20] sm:$0xff]   ;;  %v3871_v14 = vld [vmem:[#allocation3 + $0x108] sm:$0xff]  }
  0x22   :  { %v3870_v13 = vld [vmem:[#allocation3 + $0x100] sm:$0xff]   ;;  %v3872_v15 = vld [vmem:[#allocation3 + $0x110] sm:$0xff]   ;;  %v3843_v16 = vld [vmem:[#allocation3 + $0x28] sm:$0xff]   ;;  %p3949_p13 = por %p3948_p12, %p3947_p11 }
  0x23   :  { %3667 = vmatpush3.bf16.msra.mxu0 %v3831_v1  ;;  %3817 = vmatpush3.bf16.msra.mxu1 %v3831_v1  ;;  %v3844_v17 = vld [vmem:[#allocation3 + $0x30] sm:$0xff]   ;;  %v3873_v18 = vld [vmem:[#allocation3 + $0x118] sm:$0xff]   ;;  %v3874_v19 = vld [vmem:[#allocation3 + $0x120] sm:$0xff]  }
  0x24   :  { %3668 = vmatprep.subr.bf16.mxu0 %v3832_v2  ;;  %3810 = vmatprep.subr.bf16.mxu1 %v3832_v2  ;;  %v3845_v20 = vld [vmem:[#allocation3 + $0x38] sm:$0xff]   ;;  %v3846_v21 = vld [vmem:[#allocation3 + $0x40] sm:$0xff]   ;;  %v3875_v22 = vld [vmem:[#allocation3 + $0x128] sm:$0xff]   ;;  %p3950_p0 = pnand %p3949_p13, %p3943_p10 }
  0x25   :  { %3744 = vmatprep.mubr.bf16.mxu1 %v3870_v13  ;;  %v3876_v23 = vld [vmem:[#allocation3 + $0x130] sm:$0xff]   ;;  %v3847_v24 = vld [vmem:[#allocation3 + $0x48] sm:$0xff]   ;;  %v3877_v26 = vld [vmem:[#allocation3 + $0x138] sm:$0xff]  }
  0x26   :  { %v3848_v25 = vld [vmem:[#allocation3 + $0x50] sm:$0xff]   ;;  %v3878_v27 = vld [vmem:[#allocation3 + $0x140] sm:$0xff]   ;;  %v3849_v28 = vld [vmem:[#allocation3 + $0x58] sm:$0xff]  }
  0x27   :  { %3669 = vmatpush3.bf16.msra.mxu0 %v3832_v2  ;;  %3818 = vmatpush3.bf16.msra.mxu1 %v3832_v2  ;;  %v3850_v29 = vld [vmem:[#allocation3 + $0x60] sm:$0xff]   ;;  %v3879_v30 = vld [vmem:[#allocation3 + $0x148] sm:$0xff]   ;;  %v3880_v31 = vld [vmem:[#allocation3 + $0x150] sm:$0xff]  }
  0x28   :  { %3670 = vmatprep.subr.bf16.mxu0 %v3833_v3  ;;  %3811 = vmatprep.subr.bf16.mxu1 %v3833_v3  ;;  %v3851_v32 = vld [vmem:[#allocation3 + $0x68] sm:$0xff]   ;;  %v3852_v33 = vld [vmem:[#allocation3 + $0x70] sm:$0xff]   ;;  %v3881_v34 = vld [vmem:[#allocation3 + $0x158] sm:$0xff]  }
  0x29   :  { %v3882_v35 = vld [vmem:[#allocation3 + $0x160] sm:$0xff]   ;;  %v3853_v36 = vld [vmem:[#allocation3 + $0x78] sm:$0xff]   ;;  %v3883_v38 = vld [vmem:[#allocation3 + $0x168] sm:$0xff]  }
  0x2a   :  { %v3854_v37 = vld [vmem:[#allocation3 + $0x80] sm:$0xff]   ;;  %v3884_v39 = vld [vmem:[#allocation3 + $0x170] sm:$0xff]   ;;  %v3855_v40 = vld [vmem:[#allocation3 + $0x88] sm:$0xff]  }
  0x2b   :  { %3671 = vmatpush3.bf16.msra.mxu0 %v3833_v3  ;;  %3819 = vmatpush3.bf16.msra.mxu1 %v3833_v3  ;;  %v3856_v41 = vld [vmem:[#allocation3 + $0x90] sm:$0xff]   ;;  %v3885_v42 = vld [vmem:[#allocation3 + $0x178] sm:$0xff]   ;;  %v3886_v43 = vld [vmem:[#allocation3 + $0x180] sm:$0xff]  }
  0x2c   :  { %3672 = vmatprep.subr.bf16.mxu0 %v3834_v5  ;;  %3812 = vmatprep.subr.bf16.mxu1 %v3834_v5  ;;  %v3857_v44 = vld [vmem:[#allocation3 + $0x98] sm:$0xff]   ;;  %v3858_v45 = vld [vmem:[#allocation3 + $0xa0] sm:$0xff]   ;;  %v3887_v46 = vld [vmem:[#allocation3 + $0x188] sm:$0xff]  }
  0x2d   :  { %v3888_v47 = vld [vmem:[#allocation3 + $0x190] sm:$0xff]   ;;  %v3859_v48 = vld [vmem:[#allocation3 + $0xa8] sm:$0xff]   ;;  %v3889_v50 = vld [vmem:[#allocation3 + $0x198] sm:$0xff]  }
  0x2e   :  { %v3860_v49 = vld [vmem:[#allocation3 + $0xb0] sm:$0xff]   ;;  %v3890_v51 = vld [vmem:[#allocation3 + $0x1a0] sm:$0xff]   ;;  %v3861_v52 = vld [vmem:[#allocation3 + $0xb8] sm:$0xff]  }
  0x2f   :  { %3673 = vmatpush3.bf16.msra.mxu0 %v3834_v5  ;;  %3820 = vmatpush3.bf16.msra.mxu1 %v3834_v5  ;;  %v3862_v53 = vld [vmem:[#allocation3 + $0xc0] sm:$0xff]   ;;  %v3891_v54 = vld [vmem:[#allocation3 + $0x1a8] sm:$0xff]   ;;  %v3892_v55 = vld [vmem:[#allocation3 + $0x1b0] sm:$0xff]  }
  0x30   :  { %3674 = vmatprep.subr.bf16.mxu0 %v3835_v6  ;;  %3813 = vmatprep.subr.bf16.mxu1 %v3835_v6  ;;  %v3863_v56 = vld [vmem:[#allocation3 + $0xc8] sm:$0xff]   ;;  %v3864_v57 = vld [vmem:[#allocation3 + $0xd0] sm:$0xff]   ;;  %v3893_v58 = vld [vmem:[#allocation3 + $0x1b8] sm:$0xff]  }
  0x31   :  { %v3894_v59 = vld [vmem:[#allocation3 + $0x1c0] sm:$0xff]   ;;  %v3865_v60 = vld [vmem:[#allocation3 + $0xd8] sm:$0xff]   ;;  %v3895_v62 = vld [vmem:[#allocation3 + $0x1c8] sm:$0xff]  }
  0x32   :  { %v3866_v61 = vld [vmem:[#allocation3 + $0xe0] sm:$0xff]   ;;  %v3896_v63 = vld [vmem:[#allocation3 + $0x1d0] sm:$0xff]   ;;  %v3867_v0 = vld [vmem:[#allocation3 + $0xe8] sm:$0xff]  }
  0x33   :  { %3675 = vmatpush3.bf16.msra.mxu0 %v3835_v6  ;;  %3821 = vmatpush3.bf16.msra.mxu1 %v3835_v6  ;;  %v3868_v1 = vld [vmem:[#allocation3 + $0xf0] sm:$0xff]   ;;  %v3897_v2 = vld [vmem:[#allocation3 + $0x1d8] sm:$0xff]   ;;  %v3898_v3 = vld [vmem:[#allocation3 + $0x1e0] sm:$0xff]  }
  0x34   :  { %3676 = vmatprep.subr.bf16.mxu0 %v3836_v7  ;;  %3814 = vmatprep.subr.bf16.mxu1 %v3836_v7  ;;  %v3869_v4 = vld [vmem:[#allocation3 + $0xf8] sm:$0xff]   ;;  %v3899_v5 = vld [vmem:[#allocation3 + $0x1e8] sm:$0xff]   ;;  %v3900_v6 = vld [vmem:[#allocation3 + $0x1f0] sm:$0xff]  }
  0x37   :  { %3677 = vmatpush3.bf16.msra.mxu0 %v3836_v7  ;;  %3822 = vmatpush3.bf16.msra.mxu1 %v3836_v7  ;;  %v3901_v7 = vld [vmem:[#allocation3 + $0x1f8] sm:$0xff]  }
  0x38   :  { %3678 = vmatprep.subr.bf16.mxu0 %v3837_v8  ;;  %3815 = vmatprep.subr.bf16.mxu1 %v3837_v8 }
  0x3b   :  { %3679 = vmatpush3.bf16.msra.mxu0 %v3837_v8  ;;  %3823 = vmatpush3.bf16.msra.mxu1 %v3837_v8 }
  0x3e   :  { %3681 = vmatmul.mubr.bf16.vlgmr.msra.gmra.mxu0 %v3839_v9  ;;  %3745 = vmatmul.mubr.bf16.vlgmr.msra.gmra.mxu1 %v3871_v14 }
  0x3f   :  { %3684 = vmatprep.mubr.bf16.mxu0 %v3840_v10  ;;  %3748 = vmatprep.mubr.bf16.mxu1 %v3872_v15 }
  0x46   :  { %3685 = vmatmul.mubr.bf16.gmra.mxu0 %v3841_v11  ;;  %3749 = vmatmul.mubr.bf16.gmra.mxu1 %v3873_v18 }
  0x47   :  { %3688 = vmatprep.mubr.bf16.mxu0 %v3842_v12  ;;  %3752 = vmatprep.mubr.bf16.mxu1 %v3874_v19 }
  0x4e   :  { %3689 = vmatmul.mubr.bf16.gmra.mxu0 %v3843_v16  ;;  %3753 = vmatmul.mubr.bf16.gmra.mxu1 %v3875_v22 }
  0x4f   :  { %3692 = vmatprep.mubr.bf16.mxu0 %v3844_v17  ;;  %3756 = vmatprep.mubr.bf16.mxu1 %v3876_v23 }
  0x56   :  { %3693 = vmatmul.mubr.bf16.gmra.mxu0 %v3845_v20  ;;  %3757 = vmatmul.mubr.bf16.gmra.mxu1 %v3877_v26 }
  0x57   :  { %3696 = vmatprep.mubr.bf16.mxu0 %v3846_v21  ;;  %3760 = vmatprep.mubr.bf16.mxu1 %v3878_v27 }
  0x5e   :  { %3697 = vmatmul.mubr.bf16.gmra.mxu0 %v3847_v24  ;;  %3761 = vmatmul.mubr.bf16.gmra.mxu1 %v3879_v30 }
  0x5f   :  { %3700 = vmatprep.mubr.bf16.mxu0 %v3848_v25  ;;  %3764 = vmatprep.mubr.bf16.mxu1 %v3880_v31 }
  0x66   :  { %3701 = vmatmul.mubr.bf16.gmra.mxu0 %v3849_v28  ;;  %3765 = vmatmul.mubr.bf16.gmra.mxu1 %v3881_v34 }
  0x67   :  { %3704 = vmatprep.mubr.bf16.mxu0 %v3850_v29  ;;  %3768 = vmatprep.mubr.bf16.mxu1 %v3882_v35 }
  0x6e   :  { %3705 = vmatmul.mubr.bf16.gmra.mxu0 %v3851_v32  ;;  %3769 = vmatmul.mubr.bf16.gmra.mxu1 %v3883_v38 }
  0x6f   :  { %3708 = vmatprep.mubr.bf16.mxu0 %v3852_v33  ;;  %3772 = vmatprep.mubr.bf16.mxu1 %v3884_v39 }
  0x76   :  { %3709 = vmatmul.mubr.bf16.gmra.mxu0 %v3853_v36  ;;  %3773 = vmatmul.mubr.bf16.gmra.mxu1 %v3885_v42 }
  0x77   :  { %3712 = vmatprep.mubr.bf16.mxu0 %v3854_v37  ;;  %3776 = vmatprep.mubr.bf16.mxu1 %v3886_v43 }
  0x7e   :  { %3713 = vmatmul.mubr.bf16.gmra.mxu0 %v3855_v40  ;;  %3777 = vmatmul.mubr.bf16.gmra.mxu1 %v3887_v46 }
  0x7f   :  { %3716 = vmatprep.mubr.bf16.mxu0 %v3856_v41  ;;  %3780 = vmatprep.mubr.bf16.mxu1 %v3888_v47 }
  0x86   :  { %3717 = vmatmul.mubr.bf16.gmra.mxu0 %v3857_v44  ;;  %3781 = vmatmul.mubr.bf16.gmra.mxu1 %v3889_v50 }
  0x87   :  { %3720 = vmatprep.mubr.bf16.mxu0 %v3858_v45  ;;  %3784 = vmatprep.mubr.bf16.mxu1 %v3890_v51 }
  0x8e   :  { %3721 = vmatmul.mubr.bf16.gmra.mxu0 %v3859_v48  ;;  %3785 = vmatmul.mubr.bf16.gmra.mxu1 %v3891_v54 }
  0x8f   :  { %3724 = vmatprep.mubr.bf16.mxu0 %v3860_v49  ;;  %3788 = vmatprep.mubr.bf16.mxu1 %v3892_v55 }
  0x96   :  { %3725 = vmatmul.mubr.bf16.gmra.mxu0 %v3861_v52  ;;  %3789 = vmatmul.mubr.bf16.gmra.mxu1 %v3893_v58 }
  0x97   :  { %3728 = vmatprep.mubr.bf16.mxu0 %v3862_v53  ;;  %3792 = vmatprep.mubr.bf16.mxu1 %v3894_v59 }
  0x9e   :  { %3729 = vmatmul.mubr.bf16.gmra.mxu0 %v3863_v56  ;;  %3793 = vmatmul.mubr.bf16.gmra.mxu1 %v3895_v62 }
  0x9f   :  { %3732 = vmatprep.mubr.bf16.mxu0 %v3864_v57  ;;  %3796 = vmatprep.mubr.bf16.mxu1 %v3896_v63 }
  0xa6   :  { %3733 = vmatmul.mubr.bf16.gmra.mxu0 %v3865_v60  ;;  %3797 = vmatmul.mubr.bf16.gmra.mxu1 %v3897_v2 }
  0xa7   :  { %3736 = vmatprep.mubr.bf16.mxu0 %v3866_v61  ;;  %3800 = vmatprep.mubr.bf16.mxu1 %v3898_v3 }
  0xae   :  { %3737 = vmatmul.mubr.bf16.gmra.mxu0 %v3867_v0  ;;  %3801 = vmatmul.mubr.bf16.gmra.mxu1 %v3899_v5 }
  0xaf   :  { %3740 = vmatprep.mubr.bf16.mxu0 %v3868_v1  ;;  %3804 = vmatprep.mubr.bf16.mxu1 %v3900_v6 }
  0xb6   :  { %3741 = vmatmul.mubr.bf16.gmra.mxu0 %v3869_v4  ;;  %3805 = vmatmul.mubr.bf16.gmra.mxu1 %v3901_v7 }
  0xfe   :  { %v3682_v8 = vpop.f32.mrf.mxu0  ;;  %v4028_v21 = vpop.f32.mrf.mxu1 }
  0xff   :  { %v2587_v18 = vmul.f32 %v3682_v8, %v3682_v8 }
 0x100   :  { %v914_v9 = vpop.f32.mrf.mxu0  ;;  %v4030_v26 = vpop.f32.mrf.mxu1 }
 0x101   :  { %v2585_v13 = vmul.f32 %v914_v9, %v914_v9 }
 0x102   :  { %v3683_v10 = vpop.f32.mrf.mxu0  ;;  %v4032_v32 = vpop.f32.mrf.mxu1 }
 0x103   :  { %v3217_v11 = vpack.c.bf16 %v3683_v10, %v3682_v8  ;;  %v2588_v23 = vmul.f32 %v3683_v10, %v3683_v10  ;;  %v3377_v34 = vpack.c.bf16 %v4032_v32, %v4028_v21 }
 0x104   :  { %v917_v12 = vpop.f32.mrf.mxu0  ;;  %v4036_v39 = vpop.f32.mrf.mxu1 }
 0x105   :  { %3529 = vst [vmem:[#allocation8 + $0x8] sm:$0xff] %v3217_v11   ;;  %v3212_v14 = vpack.c.bf16 %v917_v12, %v914_v9  ;;  %v2452_v15 = vadd.f32 %v917_v12, %v914_v9  ;;  %v2586_v16 = vmul.f32 %v917_v12, %v917_v12  ;;  %3561 = vst [vmem:[#allocation8 + $0x108] sm:$0xff] %v3377_v34  }
 0x106   :  { %v3686_v17 = vpop.f32.mrf.mxu0  ;;  %v3372_v41 = vpack.c.bf16 %v4036_v39, %v4030_v26  ;;  %v4040_v45 = vpop.f32.mrf.mxu1 }
 0x107   :  { %3213 = vst [vmem:[#allocation8] sm:$0xff] %v3212_v14   ;;  %v2453_v19 = vadd.f32 %v3682_v8, %v2452_v15  ;;  %v2713_v20 = vadd.f32 %v2586_v16, %v2585_v13  ;;  %v2591_v42 = vmul.f32 %v3686_v17, %v3686_v17 }
 0x108   :  { %v930_v22 = vpop.f32.mrf.mxu0  ;;  %3560 = vst [vmem:[#allocation8 + $0x100] sm:$0xff] %v3372_v41   ;;  %v4042_v50 = vpop.f32.mrf.mxu1 }
 0x109   :  { %v2454_v24 = vadd.f32 %v3683_v10, %v2453_v19  ;;  %v2714_v25 = vadd.f32 %v2713_v20, %v2587_v18  ;;  %v2589_v30 = vmul.f32 %v930_v22, %v930_v22 }
 0x10a   :  { %v3687_v27 = vpop.f32.mrf.mxu0  ;;  %v4044_v56 = vpop.f32.mrf.mxu1 }
 0x10b   :  { %v2715_v28 = vadd.f32 %v2714_v25, %v2588_v23  ;;  %v2455_v29 = vadd.f32 %v2454_v24, %v930_v22  ;;  %v3227_v31 = vpack.c.bf16 %v3687_v27, %v3686_v17  ;;  %v2592_v47 = vmul.f32 %v3687_v27, %v3687_v27 }
 0x10c   :  { %v933_v33 = vpop.f32.mrf.mxu0  ;;  %v3387_v58 = vpack.c.bf16 %v4044_v56, %v4040_v45  ;;  %v4048_v63 = vpop.f32.mrf.mxu1 }
 0x10d   :  { %v2716_v35 = vadd.f32 %v2715_v28, %v2589_v30  ;;  %3531 = vst [vmem:[#allocation8 + $0x18] sm:$0xff] %v3227_v31   ;;  %v3222_v36 = vpack.c.bf16 %v933_v33, %v930_v22  ;;  %v2456_v37 = vadd.f32 %v2455_v29, %v933_v33  ;;  %v2590_v38 = vmul.f32 %v933_v33, %v933_v33 }
 0x10e   :  { %v3690_v40 = vpop.f32.mrf.mxu0  ;;  %3563 = vst [vmem:[#allocation8 + $0x118] sm:$0xff] %v3387_v58   ;;  %v3382_v1 = vpack.c.bf16 %v4048_v63, %v4042_v50  ;;  %v4052_v5 = vpop.f32.mrf.mxu1 }
 0x10f   :  { %3530 = vst [vmem:[#allocation8 + $0x10] sm:$0xff] %v3222_v36   ;;  %v2457_v43 = vadd.f32 %v3686_v17, %v2456_v37  ;;  %v2717_v44 = vadd.f32 %v2716_v35, %v2590_v38  ;;  %v2595_v2 = vmul.f32 %v3690_v40, %v3690_v40 }
 0x110   :  { %v946_v46 = vpop.f32.mrf.mxu0  ;;  %3562 = vst [vmem:[#allocation8 + $0x110] sm:$0xff] %v3382_v1   ;;  %v4054_v10 = vpop.f32.mrf.mxu1 }
 0x111   :  { %v2718_v48 = vadd.f32 %v2717_v44, %v2591_v42  ;;  %v2458_v49 = vadd.f32 %v3687_v27, %v2457_v43  ;;  %v2593_v53 = vmul.f32 %v946_v46, %v946_v46 }
 0x112   :  { %v3691_v51 = vpop.f32.mrf.mxu0  ;;  %v4056_v16 = vpop.f32.mrf.mxu1 }
 0x113   :  { %v2459_v52 = vadd.f32 %v2458_v49, %v946_v46  ;;  %v2719_v54 = vadd.f32 %v2718_v48, %v2592_v47  ;;  %v3237_v55 = vpack.c.bf16 %v3691_v51, %v3690_v40  ;;  %v2596_v7 = vmul.f32 %v3691_v51, %v3691_v51 }
 0x114   :  { %v949_v57 = vpop.f32.mrf.mxu0  ;;  %v3397_v18 = vpack.c.bf16 %v4056_v16, %v4052_v5  ;;  %v4060_v24 = vpop.f32.mrf.mxu1 }
 0x115   :  { %v2720_v59 = vadd.f32 %v2719_v54, %v2593_v53  ;;  %3533 = vst [vmem:[#allocation8 + $0x28] sm:$0xff] %v3237_v55   ;;  %v3232_v60 = vpack.c.bf16 %v949_v57, %v946_v46  ;;  %v2460_v61 = vadd.f32 %v2459_v52, %v949_v57  ;;  %v2594_v62 = vmul.f32 %v949_v57, %v949_v57 }
 0x116   :  { %v3694_v0 = vpop.f32.mrf.mxu0  ;;  %3565 = vst [vmem:[#allocation8 + $0x128] sm:$0xff] %v3397_v18   ;;  %v3392_v27 = vpack.c.bf16 %v4060_v24, %v4054_v10  ;;  %v4064_v31 = vpop.f32.mrf.mxu1 }
 0x117   :  { %3532 = vst [vmem:[#allocation8 + $0x20] sm:$0xff] %v3232_v60   ;;  %v2461_v3 = vadd.f32 %v3690_v40, %v2460_v61  ;;  %v2721_v4 = vadd.f32 %v2720_v59, %v2594_v62  ;;  %v2599_v28 = vmul.f32 %v3694_v0, %v3694_v0 }
 0x118   :  { %v962_v6 = vpop.f32.mrf.mxu0  ;;  %3564 = vst [vmem:[#allocation8 + $0x120] sm:$0xff] %v3392_v27   ;;  %v4066_v37 = vpop.f32.mrf.mxu1 }
 0x119   :  { %v2722_v8 = vadd.f32 %v2721_v4, %v2595_v2  ;;  %v2462_v9 = vadd.f32 %v3691_v51, %v2461_v3  ;;  %v2597_v13 = vmul.f32 %v962_v6, %v962_v6 }
 0x11a   :  { %v3695_v11 = vpop.f32.mrf.mxu0  ;;  %v4068_v44 = vpop.f32.mrf.mxu1 }
 0x11b   :  { %v2463_v12 = vadd.f32 %v2462_v9, %v962_v6  ;;  %v2723_v14 = vadd.f32 %v2722_v8, %v2596_v7  ;;  %v3247_v15 = vpack.c.bf16 %v3695_v11, %v3694_v0  ;;  %v2600_v34 = vmul.f32 %v3695_v11, %v3695_v11 }
 0x11c   :  { %v965_v17 = vpop.f32.mrf.mxu0  ;;  %v3407_v47 = vpack.c.bf16 %v4068_v44, %v4064_v31  ;;  %v4072_v53 = vpop.f32.mrf.mxu1 }
 0x11d   :  { %v2724_v19 = vadd.f32 %v2723_v14, %v2597_v13  ;;  %3535 = vst [vmem:[#allocation8 + $0x38] sm:$0xff] %v3247_v15   ;;  %v3242_v20 = vpack.c.bf16 %v965_v17, %v962_v6  ;;  %v2464_v22 = vadd.f32 %v2463_v12, %v965_v17  ;;  %v2598_v23 = vmul.f32 %v965_v17, %v965_v17 }
 0x11e   :  { %v3698_v25 = vpop.f32.mrf.mxu0  ;;  %3567 = vst [vmem:[#allocation8 + $0x138] sm:$0xff] %v3407_v47   ;;  %v3402_v55 = vpack.c.bf16 %v4072_v53, %v4066_v37  ;;  %v4076_v60 = vpop.f32.mrf.mxu1 }
 0x11f   :  { %3534 = vst [vmem:[#allocation8 + $0x30] sm:$0xff] %v3242_v20   ;;  %v2465_v29 = vadd.f32 %v3694_v0, %v2464_v22  ;;  %v2725_v30 = vadd.f32 %v2724_v19, %v2598_v23  ;;  %v2603_v57 = vmul.f32 %v3698_v25, %v3698_v25 }
 0x120   :  { %v978_v33 = vpop.f32.mrf.mxu0  ;;  %3566 = vst [vmem:[#allocation8 + $0x130] sm:$0xff] %v3402_v55   ;;  %v4078_v2 = vpop.f32.mrf.mxu1 }
 0x121   :  { %v2726_v35 = vadd.f32 %v2725_v30, %v2599_v28  ;;  %v2466_v36 = vadd.f32 %v3695_v11, %v2465_v29  ;;  %v2601_v41 = vmul.f32 %v978_v33, %v978_v33 }
 0x122   :  { %v3699_v38 = vpop.f32.mrf.mxu0  ;;  %v4080_v9 = vpop.f32.mrf.mxu1 }
 0x123   :  { %v2467_v40 = vadd.f32 %v2466_v36, %v978_v33  ;;  %v2727_v42 = vadd.f32 %v2726_v35, %v2600_v34  ;;  %v3257_v43 = vpack.c.bf16 %v3699_v38, %v3698_v25  ;;  %v2604_v62 = vmul.f32 %v3699_v38, %v3699_v38 }
 0x124   :  { %v981_v46 = vpop.f32.mrf.mxu0  ;;  %v3417_v12 = vpack.c.bf16 %v4080_v9, %v4076_v60  ;;  %v4084_v18 = vpop.f32.mrf.mxu1 }
 0x125   :  { %v2728_v48 = vadd.f32 %v2727_v42, %v2601_v41  ;;  %3537 = vst [vmem:[#allocation8 + $0x48] sm:$0xff] %v3257_v43   ;;  %v3252_v49 = vpack.c.bf16 %v981_v46, %v978_v33  ;;  %v2468_v51 = vadd.f32 %v2467_v40, %v981_v46  ;;  %v2602_v52 = vmul.f32 %v981_v46, %v981_v46 }
 0x126   :  { %v3702_v54 = vpop.f32.mrf.mxu0  ;;  %3569 = vst [vmem:[#allocation8 + $0x148] sm:$0xff] %v3417_v12   ;;  %v3412_v20 = vpack.c.bf16 %v4084_v18, %v4078_v2  ;;  %v4088_v27 = vpop.f32.mrf.mxu1 }
 0x127   :  { %3536 = vst [vmem:[#allocation8 + $0x40] sm:$0xff] %v3252_v49   ;;  %v2469_v58 = vadd.f32 %v3698_v25, %v2468_v51  ;;  %v2729_v59 = vadd.f32 %v2728_v48, %v2602_v52  ;;  %v2607_v22 = vmul.f32 %v3702_v54, %v3702_v54 }
 0x128   :  { %v994_v61 = vpop.f32.mrf.mxu0  ;;  %3568 = vst [vmem:[#allocation8 + $0x140] sm:$0xff] %v3412_v20   ;;  %v4090_v34 = vpop.f32.mrf.mxu1 }
 0x129   :  { %v2730_v0 = vadd.f32 %v2729_v59, %v2603_v57  ;;  %v2470_v1 = vadd.f32 %v3699_v38, %v2469_v58  ;;  %v2605_v6 = vmul.f32 %v994_v61, %v994_v61 }
 0x12a   :  { %v3703_v3 = vpop.f32.mrf.mxu0  ;;  %v4092_v42 = vpop.f32.mrf.mxu1 }
 0x12b   :  { %v2471_v4 = vadd.f32 %v2470_v1, %v994_v61  ;;  %v2731_v7 = vadd.f32 %v2730_v0, %v2604_v62  ;;  %v3267_v8 = vpack.c.bf16 %v3703_v3, %v3702_v54  ;;  %v2608_v29 = vmul.f32 %v3703_v3, %v3703_v3 }
 0x12c   :  { %v997_v11 = vpop.f32.mrf.mxu0  ;;  %v3427_v46 = vpack.c.bf16 %v4092_v42, %v4088_v27  ;;  %v4096_v52 = vpop.f32.mrf.mxu1 }
 0x12d   :  { %v2732_v13 = vadd.f32 %v2731_v7, %v2605_v6  ;;  %3539 = vst [vmem:[#allocation8 + $0x58] sm:$0xff] %v3267_v8   ;;  %v3262_v14 = vpack.c.bf16 %v997_v11, %v994_v61  ;;  %v2472_v15 = vadd.f32 %v2471_v4, %v997_v11  ;;  %v2606_v17 = vmul.f32 %v997_v11, %v997_v11 }
 0x12e   :  { %v3706_v19 = vpop.f32.mrf.mxu0  ;;  %3571 = vst [vmem:[#allocation8 + $0x158] sm:$0xff] %v3427_v46   ;;  %v3422_v55 = vpack.c.bf16 %v4096_v52, %v4090_v34  ;;  %v4100_v61 = vpop.f32.mrf.mxu1 }
 0x12f   :  { %3538 = vst [vmem:[#allocation8 + $0x50] sm:$0xff] %v3262_v14   ;;  %v2473_v23 = vadd.f32 %v3702_v54, %v2472_v15  ;;  %v2733_v25 = vadd.f32 %v2732_v13, %v2606_v17  ;;  %v2611_v57 = vmul.f32 %v3706_v19, %v3706_v19 }
 0x130   :  { %v1010_v28 = vpop.f32.mrf.mxu0  ;;  %3570 = vst [vmem:[#allocation8 + $0x150] sm:$0xff] %v3422_v55   ;;  %v4102_v4 = vpop.f32.mrf.mxu1 }
 0x131   :  { %v2734_v30 = vadd.f32 %v2733_v25, %v2607_v22  ;;  %v2474_v33 = vadd.f32 %v3703_v3, %v2473_v23  ;;  %v2609_v38 = vmul.f32 %v1010_v28, %v1010_v28 }
 0x132   :  { %v3707_v35 = vpop.f32.mrf.mxu0  ;;  %v4104_v13 = vpop.f32.mrf.mxu1 }
 0x133   :  { %v2475_v36 = vadd.f32 %v2474_v33, %v1010_v28  ;;  %v2735_v40 = vadd.f32 %v2734_v30, %v2608_v29  ;;  %v3277_v41 = vpack.c.bf16 %v3707_v35, %v3706_v19  ;;  %v2612_v0 = vmul.f32 %v3707_v35, %v3707_v35 }
 0x134   :  { %v1013_v43 = vpop.f32.mrf.mxu0  ;;  %v3437_v15 = vpack.c.bf16 %v4104_v13, %v4100_v61  ;;  %v4108_v23 = vpop.f32.mrf.mxu1 }
 0x135   :  { %v2736_v47 = vadd.f32 %v2735_v40, %v2609_v38  ;;  %3541 = vst [vmem:[#allocation8 + $0x68] sm:$0xff] %v3277_v41   ;;  %v3272_v48 = vpack.c.bf16 %v1013_v43, %v1010_v28  ;;  %v2476_v49 = vadd.f32 %v2475_v36, %v1013_v43  ;;  %v2610_v51 = vmul.f32 %v1013_v43, %v1013_v43 }
 0x136   :  { %v3710_v54 = vpop.f32.mrf.mxu0  ;;  %3573 = vst [vmem:[#allocation8 + $0x168] sm:$0xff] %v3437_v15   ;;  %v3432_v28 = vpack.c.bf16 %v4108_v23, %v4102_v4 }
 0x137   :  { %3540 = vst [vmem:[#allocation8 + $0x60] sm:$0xff] %v3272_v48   ;;  %v2477_v58 = vadd.f32 %v3706_v19, %v2476_v49  ;;  %v2737_v59 = vadd.f32 %v2736_v47, %v2610_v51  ;;  %v2615_v29 = vmul.f32 %v3710_v54, %v3710_v54 }
 0x138   :  { %v1026_v62 = vpop.f32.mrf.mxu0  ;;  %3572 = vst [vmem:[#allocation8 + $0x160] sm:$0xff] %v3432_v28  }
 0x139   :  { %v2738_v1 = vadd.f32 %v2737_v59, %v2611_v57  ;;  %v2478_v3 = vadd.f32 %v3707_v35, %v2477_v58  ;;  %v2613_v8 = vmul.f32 %v1026_v62, %v1026_v62  ;;  %v4112_v35 = vpop.f32.mrf.mxu1 }
 0x13a   :  { %v3711_v6 = vpop.f32.mrf.mxu0 }
 0x13b   :  { %v2479_v7 = vadd.f32 %v2478_v3, %v1026_v62  ;;  %v2739_v11 = vadd.f32 %v2738_v1, %v2612_v0  ;;  %v3287_v12 = vpack.c.bf16 %v3711_v6, %v3710_v54  ;;  %v2616_v38 = vmul.f32 %v3711_v6, %v3711_v6  ;;  %v4114_v43 = vpop.f32.mrf.mxu1 }
 0x13c   :  { %v1029_v14 = vpop.f32.mrf.mxu0 }
 0x13d   :  { %v2740_v17 = vadd.f32 %v2739_v11, %v2613_v8  ;;  %3543 = vst [vmem:[#allocation8 + $0x78] sm:$0xff] %v3287_v12   ;;  %v3282_v19 = vpack.c.bf16 %v1029_v14, %v1026_v62  ;;  %v2480_v20 = vadd.f32 %v2479_v7, %v1029_v14  ;;  %v2614_v22 = vmul.f32 %v1029_v14, %v1029_v14  ;;  %v4116_v55 = vpop.f32.mrf.mxu1 }
 0x13e   :  { %v3714_v25 = vpop.f32.mrf.mxu0 }
 0x13f   :  { %3542 = vst [vmem:[#allocation8 + $0x70] sm:$0xff] %v3282_v19   ;;  %v2481_v30 = vadd.f32 %v3710_v54, %v2480_v20  ;;  %v2741_v33 = vadd.f32 %v2740_v17, %v2614_v22  ;;  %v3447_v54 = vpack.c.bf16 %v4116_v55, %v4112_v35  ;;  %v4120_v1 = vpop.f32.mrf.mxu1  ;;  %v2619_v7 = vmul.f32 %v3714_v25, %v3714_v25 }
 0x140   :  { %v1042_v36 = vpop.f32.mrf.mxu0 }
 0x141   :  { %v2742_v40 = vadd.f32 %v2741_v33, %v2615_v29  ;;  %v2482_v41 = vadd.f32 %v3711_v6, %v2481_v30  ;;  %v2617_v48 = vmul.f32 %v1042_v36, %v1042_v36  ;;  %3575 = vst [vmem:[#allocation8 + $0x178] sm:$0xff] %v3447_v54   ;;  %v3442_v6 = vpack.c.bf16 %v4120_v1, %v4114_v43  ;;  %v4124_v12 = vpop.f32.mrf.mxu1 }
 0x142   :  { %v3715_v46 = vpop.f32.mrf.mxu0 }
 0x143   :  { %v2483_v47 = vadd.f32 %v2482_v41, %v1042_v36  ;;  %v2743_v49 = vadd.f32 %v2742_v40, %v2616_v38  ;;  %v3297_v51 = vpack.c.bf16 %v3715_v46, %v3714_v25  ;;  %3574 = vst [vmem:[#allocation8 + $0x170] sm:$0xff] %v3442_v6   ;;  %v2620_v15 = vmul.f32 %v3715_v46, %v3715_v46  ;;  %v4126_v20 = vpop.f32.mrf.mxu1 }
 0x144   :  { %v1045_v57 = vpop.f32.mrf.mxu0 }
 0x145   :  { %v2744_v58 = vadd.f32 %v2743_v49, %v2617_v48  ;;  %3545 = vst [vmem:[#allocation8 + $0x88] sm:$0xff] %v3297_v51   ;;  %v3292_v59 = vpack.c.bf16 %v1045_v57, %v1042_v36  ;;  %v2484_v62 = vadd.f32 %v2483_v47, %v1045_v57  ;;  %v2618_v0 = vmul.f32 %v1045_v57, %v1045_v57  ;;  %v4128_v36 = vpop.f32.mrf.mxu1 }
 0x146   :  { %v3718_v3 = vpop.f32.mrf.mxu0 }
 0x147   :  { %3544 = vst [vmem:[#allocation8 + $0x80] sm:$0xff] %v3292_v59   ;;  %v2485_v8 = vadd.f32 %v3714_v25, %v2484_v62  ;;  %v2745_v11 = vadd.f32 %v2744_v58, %v2618_v0  ;;  %v3457_v25 = vpack.c.bf16 %v4128_v36, %v4124_v12  ;;  %v4132_v49 = vpop.f32.mrf.mxu1  ;;  %v2623_v57 = vmul.f32 %v3718_v3, %v3718_v3 }
 0x148   :  { %v1058_v14 = vpop.f32.mrf.mxu0  ;;  %v3452_v51 = vpack.c.bf16 %v4132_v49, %v4126_v20 }
 0x149   :  { %v2746_v17 = vadd.f32 %v2745_v11, %v2619_v7  ;;  %v2486_v19 = vadd.f32 %v3715_v46, %v2485_v8  ;;  %v2621_v29 = vmul.f32 %v1058_v14, %v1058_v14  ;;  %3577 = vst [vmem:[#allocation8 + $0x188] sm:$0xff] %v3457_v25   ;;  %v4136_v59 = vpop.f32.mrf.mxu1 }
 0x14a   :  { %v3719_v22 = vpop.f32.mrf.mxu0  ;;  %3576 = vst [vmem:[#allocation8 + $0x180] sm:$0xff] %v3452_v51  }
 0x14b   :  { %v2487_v28 = vadd.f32 %v2486_v19, %v1058_v14  ;;  %v2747_v30 = vadd.f32 %v2746_v17, %v2620_v15  ;;  %v3307_v33 = vpack.c.bf16 %v3719_v22, %v3718_v3  ;;  %v2624_v0 = vmul.f32 %v3719_v22, %v3719_v22  ;;  %v4138_v8 = vpop.f32.mrf.mxu1 }
 0x14c   :  { %v1061_v38 = vpop.f32.mrf.mxu0 }
 0x14d   :  { %v2748_v40 = vadd.f32 %v2747_v30, %v2621_v29  ;;  %3547 = vst [vmem:[#allocation8 + $0x98] sm:$0xff] %v3307_v33   ;;  %v3302_v41 = vpack.c.bf16 %v1061_v38, %v1058_v14  ;;  %v2488_v47 = vadd.f32 %v2487_v28, %v1061_v38  ;;  %v2622_v48 = vmul.f32 %v1061_v38, %v1061_v38  ;;  %v4140_v28 = vpop.f32.mrf.mxu1 }
 0x14e   :  { %v3722_v46 = vpop.f32.mrf.mxu0  ;;  %4457 = vst [vmem:[#allocation15_spill] sm:$0xff] %v4140_v28 }
 0x14f   :  { %3546 = vst [vmem:[#allocation8 + $0x90] sm:$0xff] %v3302_v41   ;;  %v2489_v54 = vadd.f32 %v3718_v3, %v2488_v47  ;;  %v2749_v58 = vadd.f32 %v2748_v40, %v2622_v48  ;;  %v3467_v3 = vpack.c.bf16 %v4140_v28, %v4136_v59  ;;  %v4144_v40 = vpop.f32.mrf.mxu1  ;;  %v2627_v47 = vmul.f32 %v3722_v46, %v3722_v46 }
 0x150   :  { %v1074_v62 = vpop.f32.mrf.mxu0  ;;  %v3462_v41 = vpack.c.bf16 %v4144_v40, %v4138_v8 }
 0x151   :  { %v2750_v6 = vadd.f32 %v2749_v58, %v2623_v57  ;;  %v2490_v7 = vadd.f32 %v3719_v22, %v2489_v54  ;;  %v2625_v15 = vmul.f32 %v1074_v62, %v1074_v62  ;;  %3579 = vst [vmem:[#allocation8 + $0x198] sm:$0xff] %v3467_v3   ;;  %v4148_v57 = vpop.f32.mrf.mxu1 }
 0x152   :  { %v3723_v11 = vpop.f32.mrf.mxu0  ;;  %4458 = vst [vmem:[#allocation16_spill] sm:$0xff] %v4148_v57  ;;  %3578 = vst [vmem:[#allocation8 + $0x190] sm:$0xff] %v3462_v41  }
 0x153   :  { %v2491_v14 = vadd.f32 %v2490_v7, %v1074_v62  ;;  %v2751_v17 = vadd.f32 %v2750_v6, %v2624_v0  ;;  %v3317_v19 = vpack.c.bf16 %v3723_v11, %v3722_v46  ;;  %v2628_v58 = vmul.f32 %v3723_v11, %v3723_v11  ;;  %v4150_v6 = vpop.f32.mrf.mxu1 }
 0x154   :  { %v1077_v29 = vpop.f32.mrf.mxu0  ;;  %4459 = vst [vmem:[#allocation17_spill] sm:$0xff] %v4150_v6 }
 0x155   :  { %v2752_v30 = vadd.f32 %v2751_v17, %v2625_v15  ;;  %3549 = vst [vmem:[#allocation8 + $0xa8] sm:$0xff] %v3317_v19   ;;  %v3312_v33 = vpack.c.bf16 %v1077_v29, %v1074_v62  ;;  %v2492_v38 = vadd.f32 %v2491_v14, %v1077_v29  ;;  %v2626_v25 = vmul.f32 %v1077_v29, %v1077_v29  ;;  %v4152_v29 = vpop.f32.mrf.mxu1 }
 0x156   :  { %v3726_v22 = vpop.f32.mrf.mxu0  ;;  %4460 = vst [vmem:[#allocation18_spill] sm:$0xff] %v4152_v29 }
 0x157   :  { %3548 = vst [vmem:[#allocation8 + $0xa0] sm:$0xff] %v3312_v33   ;;  %v2493_v48 = vadd.f32 %v3722_v46, %v2492_v38  ;;  %v2753_v51 = vadd.f32 %v2752_v30, %v2626_v25  ;;  %v3477_v46 = vpack.c.bf16 %v4152_v29, %v4148_v57  ;;  %v4156_v41 = vpop.f32.mrf.mxu1 }
 0x158   :  { %v1090_v54 = vpop.f32.mrf.mxu0  ;;  %4461 = vst [vmem:[#allocation19_spill] sm:$0xff] %v4156_v41 }
 0x159   :  { %v2754_v0 = vadd.f32 %v2753_v51, %v2627_v47  ;;  %v2494_v62 = vadd.f32 %v3723_v11, %v2493_v48  ;;  %v2629_v15 = vmul.f32 %v1090_v54, %v1090_v54  ;;  %3581 = vst [vmem:[#allocation8 + $0x1a8] sm:$0xff] %v3477_v46   ;;  %v3472_v47 = vpack.c.bf16 %v4156_v41, %v4150_v6 }
 0x15a   :  { %v3727_v7 = vpop.f32.mrf.mxu0  ;;  %v2631_v48 = vmul.f32 %v3726_v22, %v3726_v22 }
 0x15b   :  { %v2495_v14 = vadd.f32 %v2494_v62, %v1090_v54  ;;  %v2755_v17 = vadd.f32 %v2754_v0, %v2628_v58  ;;  %v3327_v19 = vpack.c.bf16 %v3727_v7, %v3726_v22  ;;  %v4160_v0 = vpop.f32.mrf.mxu1  ;;  %3580 = vst [vmem:[#allocation8 + $0x1a0] sm:$0xff] %v3472_v47  }
 0x15c   :  { %v1093_v3 = vpop.f32.mrf.mxu0  ;;  %4462 = vst [vmem:[#allocation20_spill] sm:$0xff] %v4160_v0 }
 0x15d   :  { %v2756_v30 = vadd.f32 %v2755_v17, %v2629_v15  ;;  %3551 = vst [vmem:[#allocation8 + $0xb8] sm:$0xff] %v3327_v19   ;;  %v3322_v33 = vpack.c.bf16 %v1093_v3, %v1090_v54  ;;  %v2496_v38 = vadd.f32 %v2495_v14, %v1093_v3  ;;  %v2630_v25 = vmul.f32 %v1093_v3, %v1093_v3  ;;  %v4162_v14 = vpop.f32.mrf.mxu1 }
 0x15e   :  { %v3730_v11 = vpop.f32.mrf.mxu0  ;;  %v2632_v15 = vmul.f32 %v3727_v7, %v3727_v7  ;;  %4463 = vst [vmem:[#allocation21_spill] sm:$0xff] %v4162_v14 }
 0x15f   :  { %3550 = vst [vmem:[#allocation8 + $0xb0] sm:$0xff] %v3322_v33   ;;  %v2497_v51 = vadd.f32 %v3726_v22, %v2496_v38  ;;  %v2757_v58 = vadd.f32 %v2756_v30, %v2630_v25  ;;  %v4164_v28 = vpop.f32.mrf.mxu1 }
 0x160   :  { %v1106_v62 = vpop.f32.mrf.mxu0  ;;  %4464 = vst [vmem:[#allocation22_spill] sm:$0xff] %v4164_v28  ;;  %v3487_v22 = vpack.c.bf16 %v4164_v28, %v4160_v0 }
 0x161   :  { %v2758_v17 = vadd.f32 %v2757_v58, %v2631_v48  ;;  %v2498_v54 = vadd.f32 %v3727_v7, %v2497_v51  ;;  %v2633_v29 = vmul.f32 %v1106_v62, %v1106_v62  ;;  %v4168_v47 = vpop.f32.mrf.mxu1  ;;  %v2635_v51 = vmul.f32 %v3730_v11, %v3730_v11 }
 0x162   :  { %v3731_v19 = vpop.f32.mrf.mxu0  ;;  %4465 = vst [vmem:[#allocation23_spill] sm:$0xff] %v4168_v47  ;;  %3583 = vst [vmem:[#allocation8 + $0x1b8] sm:$0xff] %v3487_v22   ;;  %v3482_v48 = vpack.c.bf16 %v4168_v47, %v4162_v14 }
 0x163   :  { %v2499_v3 = vadd.f32 %v2498_v54, %v1106_v62  ;;  %v2759_v46 = vadd.f32 %v2758_v17, %v2632_v15  ;;  %v3337_v57 = vpack.c.bf16 %v3731_v19, %v3730_v11  ;;  %v4172_v17 = vpop.f32.mrf.mxu1 }
 0x164   :  { %v1109_v41 = vpop.f32.mrf.mxu0  ;;  %4466 = vst [vmem:[#allocation24_spill] sm:$0xff] %v4172_v17  ;;  %3582 = vst [vmem:[#allocation8 + $0x1b0] sm:$0xff] %v3482_v48  }
 0x165   :  { %v2760_v30 = vadd.f32 %v2759_v46, %v2633_v29  ;;  %3553 = vst [vmem:[#allocation8 + $0xc8] sm:$0xff] %v3337_v57   ;;  %v3332_v33 = vpack.c.bf16 %v1109_v41, %v1106_v62  ;;  %v2500_v38 = vadd.f32 %v2499_v3, %v1109_v41  ;;  %v2634_v25 = vmul.f32 %v1109_v41, %v1109_v41  ;;  %v4174_v3 = vpop.f32.mrf.mxu1 }
 0x166   :  { %v3734_v7 = vpop.f32.mrf.mxu0  ;;  %v2636_v29 = vmul.f32 %v3731_v19, %v3731_v19  ;;  %4467 = vst [vmem:[#allocation25_spill] sm:$0xff] %v4174_v3 }
 0x167   :  { %3552 = vst [vmem:[#allocation8 + $0xc0] sm:$0xff] %v3332_v33   ;;  %v2501_v58 = vadd.f32 %v3730_v11, %v2500_v38  ;;  %v2761_v15 = vadd.f32 %v2760_v30, %v2634_v25  ;;  %v4176_v6 = vpop.f32.mrf.mxu1 }
 0x168   :  { %v1122_v54 = vpop.f32.mrf.mxu0  ;;  %4468 = vst [vmem:[#allocation26_spill] sm:$0xff] %v4176_v6  ;;  %v3497_v11 = vpack.c.bf16 %v4176_v6, %v4172_v17 }
 0x169   :  { %v2762_v57 = vadd.f32 %v2761_v15, %v2635_v51  ;;  %v2502_v62 = vadd.f32 %v3731_v19, %v2501_v58  ;;  %v2637_v28 = vmul.f32 %v1122_v54, %v1122_v54  ;;  %v4180_v48 = vpop.f32.mrf.mxu1  ;;  %v2639_v58 = vmul.f32 %v3734_v7, %v3734_v7 }
 0x16a   :  { %v3735_v41 = vpop.f32.mrf.mxu0  ;;  %4469 = vst [vmem:[#allocation27_spill] sm:$0xff] %v4180_v48  ;;  %3585 = vst [vmem:[#allocation8 + $0x1c8] sm:$0xff] %v3497_v11   ;;  %v3492_v51 = vpack.c.bf16 %v4180_v48, %v4174_v3 }
 0x16b   :  { %v2503_v46 = vadd.f32 %v2502_v62, %v1122_v54  ;;  %v2763_v22 = vadd.f32 %v2762_v57, %v2636_v29  ;;  %v3347_v0 = vpack.c.bf16 %v3735_v41, %v3734_v7  ;;  %v4184_v57 = vpop.f32.mrf.mxu1 }
 0x16c   :  { %v1125_v47 = vpop.f32.mrf.mxu0  ;;  %4470 = vst [vmem:[#allocation28_spill] sm:$0xff] %v4184_v57  ;;  %3584 = vst [vmem:[#allocation8 + $0x1c0] sm:$0xff] %v3492_v51  }
 0x16d   :  { %v2764_v30 = vadd.f32 %v2763_v22, %v2637_v28  ;;  %3555 = vst [vmem:[#allocation8 + $0xd8] sm:$0xff] %v3347_v0   ;;  %v3342_v33 = vpack.c.bf16 %v1125_v47, %v1122_v54  ;;  %v2504_v38 = vadd.f32 %v2503_v46, %v1125_v47  ;;  %v2638_v25 = vmul.f32 %v1125_v47, %v1125_v47  ;;  %v4186_v46 = vpop.f32.mrf.mxu1 }
 0x16e   :  { %v3738_v19 = vpop.f32.mrf.mxu0  ;;  %v2640_v28 = vmul.f32 %v3735_v41, %v3735_v41 }
 0x16f   :  { %3554 = vst [vmem:[#allocation8 + $0xd0] sm:$0xff] %v3342_v33   ;;  %v2505_v15 = vadd.f32 %v3734_v7, %v2504_v38  ;;  %v2765_v29 = vadd.f32 %v2764_v30, %v2638_v25  ;;  %v4188_v14 = vpop.f32.mrf.mxu1 }
 0x170   :  { %v1138_v62 = vpop.f32.mrf.mxu0  ;;  %4471 = vst [vmem:[#allocation29_spill] sm:$0xff] %v4188_v14  ;;  %v3507_v7 = vpack.c.bf16 %v4188_v14, %v4184_v57 }
 0x171   :  { %v2766_v0 = vadd.f32 %v2765_v29, %v2639_v58  ;;  %v2506_v54 = vadd.f32 %v3735_v41, %v2505_v15  ;;  %v2641_v6 = vmul.f32 %v1138_v62, %v1138_v62  ;;  %v4192_v51 = vpop.f32.mrf.mxu1  ;;  %v2643_v15 = vmul.f32 %v3738_v19, %v3738_v19 }
 0x172   :  { %v3739_v47 = vpop.f32.mrf.mxu0  ;;  %4472 = vst [vmem:[#allocation30_spill] sm:$0xff] %v4192_v51  ;;  %3587 = vst [vmem:[#allocation8 + $0x1d8] sm:$0xff] %v3507_v7   ;;  %v3502_v58 = vpack.c.bf16 %v4192_v51, %v4186_v46 }
 0x173   :  { %v2507_v22 = vadd.f32 %v2506_v54, %v1138_v62  ;;  %v2767_v11 = vadd.f32 %v2766_v0, %v2640_v28  ;;  %v3357_v17 = vpack.c.bf16 %v3739_v47, %v3738_v19  ;;  %v4196_v0 = vpop.f32.mrf.mxu1 }
 0x174   :  { %v1141_v48 = vpop.f32.mrf.mxu0  ;;  %3586 = vst [vmem:[#allocation8 + $0x1d0] sm:$0xff] %v3502_v58  }
 0x175   :  { %v2768_v30 = vadd.f32 %v2767_v11, %v2641_v6  ;;  %3557 = vst [vmem:[#allocation8 + $0xe8] sm:$0xff] %v3357_v17   ;;  %v3352_v33 = vpack.c.bf16 %v1141_v48, %v1138_v62  ;;  %v2508_v38 = vadd.f32 %v2507_v22, %v1141_v48  ;;  %v2642_v25 = vmul.f32 %v1141_v48, %v1141_v48  ;;  %v4198_v22 = vpop.f32.mrf.mxu1 }
 0x176   :  { %v3742_v41 = vpop.f32.mrf.mxu0  ;;  %v2644_v6 = vmul.f32 %v3739_v47, %v3739_v47 }
 0x177   :  { %3556 = vst [vmem:[#allocation8 + $0xe0] sm:$0xff] %v3352_v33   ;;  %v2509_v29 = vadd.f32 %v3738_v19, %v2508_v38  ;;  %v2769_v28 = vadd.f32 %v2768_v30, %v2642_v25  ;;  %v4200_v3 = vpop.f32.mrf.mxu1 }
 0x178   :  { %v1154_v54 = vpop.f32.mrf.mxu0  ;;  %v3517_v19 = vpack.c.bf16 %v4200_v3, %v4196_v0 }
 0x179   :  { %v2770_v17 = vadd.f32 %v2769_v28, %v2643_v15  ;;  %v2510_v62 = vadd.f32 %v3739_v47, %v2509_v29  ;;  %v2645_v14 = vmul.f32 %v1154_v54, %v1154_v54  ;;  %v4204_v58 = vpop.f32.mrf.mxu1  ;;  %v2647_v15 = vmul.f32 %v3742_v41, %v3742_v41 }
 0x17a   :  { %v3743_v48 = vpop.f32.mrf.mxu0  ;;  %3589 = vst [vmem:[#allocation8 + $0x1e8] sm:$0xff] %v3517_v19   ;;  %v3512_v47 = vpack.c.bf16 %v4204_v58, %v4198_v22 }
 0x17b   :  { %v2511_v11 = vadd.f32 %v2510_v62, %v1154_v54  ;;  %v2771_v7 = vadd.f32 %v2770_v17, %v2644_v6  ;;  %v3367_v57 = vpack.c.bf16 %v3743_v48, %v3742_v41  ;;  %v4208_v6 = vpop.f32.mrf.mxu1  ;;  %v2648_v17 = vmul.f32 %v3743_v48, %v3743_v48 }
 0x17c   :  { %v1157_v51 = vpop.f32.mrf.mxu0  ;;  %3588 = vst [vmem:[#allocation8 + $0x1e0] sm:$0xff] %v3512_v47  }
 0x17d   :  { %v2772_v30 = vadd.f32 %v2771_v7, %v2645_v14  ;;  %3559 = vst [vmem:[#allocation8 + $0xf8] sm:$0xff] %v3367_v57   ;;  %v3362_v33 = vpack.c.bf16 %v1157_v51, %v1154_v54  ;;  %v2512_v38 = vadd.f32 %v2511_v11, %v1157_v51  ;;  %v2646_v25 = vmul.f32 %v1157_v51, %v1157_v51  ;;  %v4210_v57 = vpop.f32.mrf.mxu1 }
 0x17e   :  { %v2649_v51 = vmul.f32 %v4030_v26, %v4030_v26 }
 0x17f   :  { %3558 = vst [vmem:[#allocation8 + $0xf0] sm:$0xff] %v3362_v33   ;;  %v2513_v29 = vadd.f32 %v3742_v41, %v2512_v38  ;;  %v2773_v28 = vadd.f32 %v2772_v30, %v2646_v25  ;;  %v4215_v7 = vpop.f32.mrf.mxu1 }
 0x180   :  { %v3527_v41 = vpack.c.bf16 %v4215_v7, %v4208_v6 }
 0x181   :  { %v2514_v62 = vadd.f32 %v3743_v48, %v2513_v29  ;;  %v2774_v14 = vadd.f32 %v2773_v28, %v2647_v15  ;;  %v2650_v48 = vmul.f32 %v4036_v39, %v4036_v39  ;;  %v4222_v33 = vpop.f32.mrf.mxu1  ;;  %v2652_v15 = vmul.f32 %v4032_v32, %v4032_v32 }
 0x182   :  { %3591 = vst [vmem:[#allocation8 + $0x1f8] sm:$0xff] %v3527_v41   ;;  %v3522_v38 = vpack.c.bf16 %v4222_v33, %v4210_v57 }
 0x183   :  { %v2515_v54 = vadd.f32 %v2514_v62, %v4030_v26  ;;  %v2775_v11 = vadd.f32 %v2774_v14, %v2648_v17  ;;  %v2651_v26 = vmul.f32 %v4028_v21, %v4028_v21 }
 0x184   :  { %3590 = vst [vmem:[#allocation8 + $0x1f0] sm:$0xff] %v3522_v38  }
 0x185   :  { %v2776_v19 = vadd.f32 %v2775_v11, %v2649_v51  ;;  %v2516_v30 = vadd.f32 %v2515_v54, %v4036_v39 }
 0x187   :  { %v2517_v25 = vadd.f32 %v4028_v21, %v2516_v30  ;;  %v2777_v47 = vadd.f32 %v2776_v19, %v2650_v48 }
 0x189   :  { %v2778_v29 = vadd.f32 %v2777_v47, %v2651_v26  ;;  %v2518_v39 = vadd.f32 %v4032_v32, %v2517_v25 }
 0x18a   :  { %3953 = shalt.err (!%p3950_p0)
}
 0x18b   :  { %2860 = dma.vmem_to_hbm [thread:$0]  %s2855_s1, 8192, %s4423_s2, [#allocation5], %s3991_s15, %s3991_s15, %s3992_s16   ;;  %v2519_v21 = vadd.f32 %v2518_v39, %v4042_v50  ;;  %v2653_v32 = vmul.f32 %v4042_v50, %v4042_v50  ;;  %v2779_v28 = vadd.f32 %v2778_v29, %v2652_v15  ;;  %v2654_v14 = vmul.f32 %v4048_v63, %v4048_v63 }
 0x18c   :  { %v2655_v51 = vmul.f32 %v4040_v45, %v4040_v45  ;;  %v2656_v41 = vmul.f32 %v4044_v56, %v4044_v56  ;;  %v2657_v48 = vmul.f32 %v4054_v10, %v4054_v10  ;;  %v2658_v25 = vmul.f32 %v4060_v24, %v4060_v24  ;;  %s3995_s2 = smov [#allocation9]  }
 0x18d   :  { %v2780_v17 = vadd.f32 %v2779_v28, %v2653_v32  ;;  %v2520_v62 = vadd.f32 %v2519_v21, %v4048_v63  ;;  %v2661_v21 = vmul.f32 %v4066_v37, %v4066_v37  ;;  %s2867_s27 = sshll.u32 %s3995_s2, 4  ;;  %vm2846_vm0 = vcmask 1040384   ;;  %s2868_s27 = int_to_ptr.vmem [resolvable:$true] %s2867_s27 }
 0x18e   :  { %s3962_s28 = scalar_lea.vmem %s2868_s27, 32  ;;  %p3967_p2 = scmp.lt.s32.totalorder %s2868_s27, %s2868_s27 }
 0x18f   :  { %v2521_v54 = vadd.f32 %v4040_v45, %v2520_v62  ;;  %v2781_v11 = vadd.f32 %v2780_v17, %v2654_v14  ;;  %v2659_v45 = vmul.f32 %v4052_v5, %v4052_v5  ;;  %v2662_v17 = vmul.f32 %v4072_v53, %v4072_v53  ;;  %p3963_p1 = scmp.ne.s32.totalorder %s2868_s27, %s3962_s28  ;;  %p3968_p3 = scmp.lt.s32.totalorder %s3962_s28, %s3962_s28 }
 0x191   :  { %v2782_v19 = vadd.f32 %v2781_v11, %v2655_v51  ;;  %v2522_v30 = vadd.f32 %v4044_v56, %v2521_v54  ;;  %v2660_v56 = vmul.f32 %v4056_v16, %v4056_v16  ;;  %v2665_v11 = vmul.f32 %v4078_v2, %v4078_v2  ;;  %p3969_p4 = por %p3968_p3, %p3967_p2 }
 0x193   :  { %v2523_v50 = vadd.f32 %v2522_v30, %v4054_v10  ;;  %v2783_v38 = vadd.f32 %v2782_v19, %v2656_v41  ;;  %v2666_v30 = vmul.f32 %v4084_v18, %v4084_v18  ;;  %p3970_p5 = pnand %p3969_p4, %p3963_p1 }
 0x195   :  { %v2784_v26 = vadd.f32 %v2783_v38, %v2657_v48  ;;  %v2524_v63 = vadd.f32 %v2523_v50, %v4060_v24 }
 0x197   :  { %v2525_v47 = vadd.f32 %v4052_v5, %v2524_v63  ;;  %v2785_v15 = vadd.f32 %v2784_v26, %v2658_v25  ;;  %v2663_v5 = vmul.f32 %v4064_v31, %v4064_v31  ;;  %v2669_v63 = vmul.f32 %v4090_v34, %v4090_v34 }
 0x199   :  { %v2786_v29 = vadd.f32 %v2785_v15, %v2659_v45  ;;  %v2526_v39 = vadd.f32 %v4056_v16, %v2525_v47  ;;  %v2664_v16 = vmul.f32 %v4068_v44, %v4068_v44  ;;  %v2670_v47 = vmul.f32 %v4096_v52, %v4096_v52 }
 0x19b   :  { %v2527_v10 = vadd.f32 %v2526_v39, %v4066_v37  ;;  %v2787_v32 = vadd.f32 %v2786_v29, %v2660_v56 }
 0x19d   :  { %v2788_v28 = vadd.f32 %v2787_v32, %v2661_v21  ;;  %v2528_v24 = vadd.f32 %v2527_v10, %v4072_v53  ;;  %v2673_v10 = vmul.f32 %v4102_v4, %v4102_v4 }
 0x19f   :  { %v2529_v62 = vadd.f32 %v4064_v31, %v2528_v24  ;;  %v2789_v14 = vadd.f32 %v2788_v28, %v2662_v17  ;;  %v2667_v31 = vmul.f32 %v4076_v60, %v4076_v60  ;;  %v2674_v28 = vmul.f32 %v4108_v23, %v4108_v23 }
 0x1a1   :  { %v2790_v51 = vadd.f32 %v2789_v14, %v2663_v5  ;;  %v2530_v54 = vadd.f32 %v4068_v44, %v2529_v62  ;;  %v2668_v44 = vmul.f32 %v4080_v9, %v4080_v9  ;;  %v2677_v14 = vmul.f32 %v4114_v43, %v4114_v43 }
 0x1a3   :  { %v2531_v37 = vadd.f32 %v2530_v54, %v4078_v2  ;;  %v2791_v41 = vadd.f32 %v2790_v51, %v2664_v16  ;;  %v2678_v54 = vmul.f32 %v4120_v1, %v4120_v1 }
 0x1a5   :  { %v2792_v19 = vadd.f32 %v2791_v41, %v2665_v11  ;;  %v2532_v53 = vadd.f32 %v2531_v37, %v4084_v18 }
 0x1a7   :  { %v2533_v50 = vadd.f32 %v4076_v60, %v2532_v53  ;;  %v2793_v48 = vadd.f32 %v2792_v19, %v2666_v30  ;;  %v2671_v60 = vmul.f32 %v4088_v27, %v4088_v27  ;;  %v2681_v53 = vmul.f32 %v4126_v20, %v4126_v20 }
 0x1a9   :  { %v2794_v38 = vadd.f32 %v2793_v48, %v2667_v31  ;;  %v2534_v26 = vadd.f32 %v4080_v9, %v2533_v50  ;;  %v2672_v9 = vmul.f32 %v4092_v42, %v4092_v42  ;;  %v2682_v50 = vmul.f32 %v4132_v49, %v4132_v49 }
 0x1ab   :  { %v2535_v2 = vadd.f32 %v2534_v26, %v4090_v34  ;;  %v2795_v25 = vadd.f32 %v2794_v38, %v2668_v44 }
 0x1ad   :  { %v2796_v45 = vadd.f32 %v2795_v25, %v2669_v63  ;;  %v2536_v18 = vadd.f32 %v2535_v2, %v4096_v52  ;;  %v2685_v2 = vmul.f32 %v4138_v8, %v4138_v8 }
 0x1af   :  { %v2537_v15 = vadd.f32 %v4088_v27, %v2536_v18  ;;  %v2797_v56 = vadd.f32 %v2796_v45, %v2670_v47  ;;  %v2675_v27 = vmul.f32 %v4100_v61, %v4100_v61  ;;  %v2686_v45 = vmul.f32 %v4144_v40, %v4144_v40 }
 0x1b1   :  { %v2798_v29 = vadd.f32 %v2797_v56, %v2671_v60  ;;  %v2538_v39 = vadd.f32 %v4092_v42, %v2537_v15  ;;  %v2676_v42 = vmul.f32 %v4104_v13, %v4104_v13  ;;  %v4473_v60 = vld [vmem:[#allocation15_spill] sm:$0xff] }
 0x1b3   :  { %v2539_v34 = vadd.f32 %v2538_v39, %v4102_v4  ;;  %v2799_v21 = vadd.f32 %v2798_v29, %v2672_v9 }
 0x1b5   :  { %v2800_v32 = vadd.f32 %v2799_v21, %v2673_v10  ;;  %v2540_v52 = vadd.f32 %v2539_v34, %v4108_v23 }
 0x1b7   :  { %v2541_v24 = vadd.f32 %v4100_v61, %v2540_v52  ;;  %v2801_v17 = vadd.f32 %v2800_v32, %v2674_v28  ;;  %v2679_v61 = vmul.f32 %v4112_v35, %v4112_v35 }
 0x1b9   :  { %v2802_v5 = vadd.f32 %v2801_v17, %v2675_v27  ;;  %v2542_v62 = vadd.f32 %v4104_v13, %v2541_v24  ;;  %v2680_v13 = vmul.f32 %v4116_v55, %v4116_v55  ;;  %v4477_v27 = vld [vmem:[#allocation18_spill] sm:$0xff] }
 0x1ba   :  { %v2692_v24 = vmul.f32 %v4477_v27, %v4477_v27 }
 0x1bb   :  { %v2543_v4 = vadd.f32 %v2542_v62, %v4114_v43  ;;  %v2803_v16 = vadd.f32 %v2802_v5, %v2676_v42  ;;  %v4478_v5 = vld [vmem:[#allocation21_spill] sm:$0xff] }
 0x1bd   :  { %v2804_v51 = vadd.f32 %v2803_v16, %v2677_v14  ;;  %v2544_v23 = vadd.f32 %v2543_v4, %v4120_v1  ;;  %v2693_v4 = vmul.f32 %v4478_v5, %v4478_v5 }
 0x1bf   :  { %v2545_v37 = vadd.f32 %v4112_v35, %v2544_v23  ;;  %v2805_v11 = vadd.f32 %v2804_v51, %v2678_v54  ;;  %v2683_v35 = vmul.f32 %v4124_v12, %v4124_v12  ;;  %v4479_v51 = vld [vmem:[#allocation23_spill] sm:$0xff] }
 0x1c0   :  { %v2694_v54 = vmul.f32 %v4479_v51, %v4479_v51 }
 0x1c1   :  { %v2806_v41 = vadd.f32 %v2805_v11, %v2679_v61  ;;  %v2546_v19 = vadd.f32 %v4116_v55, %v2545_v37  ;;  %v2684_v55 = vmul.f32 %v4128_v36, %v4128_v36  ;;  %v4480_v61 = vld [vmem:[#allocation20_spill] sm:$0xff] }
 0x1c2   :  { %v2695_v37 = vmul.f32 %v4480_v61, %v4480_v61 }
 0x1c3   :  { %v2547_v43 = vadd.f32 %v2546_v19, %v4126_v20  ;;  %v2807_v30 = vadd.f32 %v2806_v41, %v2680_v13  ;;  %v4481_v41 = vld [vmem:[#allocation22_spill] sm:$0xff] }
 0x1c4   :  { %v2696_v19 = vmul.f32 %v4481_v41, %v4481_v41 }
 0x1c5   :  { %v2808_v31 = vadd.f32 %v2807_v30, %v2681_v53  ;;  %v2548_v1 = vadd.f32 %v2547_v43, %v4132_v49  ;;  %v4482_v30 = vld [vmem:[#allocation25_spill] sm:$0xff] }
 0x1c7   :  { %v2549_v48 = vadd.f32 %v4124_v12, %v2548_v1  ;;  %v2809_v44 = vadd.f32 %v2808_v31, %v2682_v50  ;;  %v2687_v12 = vmul.f32 %v4136_v59, %v4136_v59  ;;  %v2697_v1 = vmul.f32 %v4482_v30, %v4482_v30 }
 0x1c9   :  { %v2810_v38 = vadd.f32 %v2809_v44, %v2683_v35  ;;  %v2550_v26 = vadd.f32 %v4128_v36, %v2549_v48  ;;  %v2688_v36 = vmul.f32 %v4473_v60, %v4473_v60  ;;  %v4483_v48 = vld [vmem:[#allocation27_spill] sm:$0xff] }
 0x1cb   :  { %v2551_v20 = vadd.f32 %v2550_v26, %v4138_v8  ;;  %v2811_v63 = vadd.f32 %v2810_v38, %v2684_v55  ;;  %v4474_v8 = vld [vmem:[#allocation17_spill] sm:$0xff]  ;;  %v2698_v55 = vmul.f32 %v4483_v48, %v4483_v48  ;;  %v4484_v38 = vld [vmem:[#allocation24_spill] sm:$0xff] }
 0x1cc   :  { %v2689_v29 = vmul.f32 %v4474_v8, %v4474_v8  ;;  %v2699_v26 = vmul.f32 %v4484_v38, %v4484_v38 }
 0x1cd   :  { %v2812_v25 = vadd.f32 %v2811_v63, %v2685_v2  ;;  %v2552_v49 = vadd.f32 %v2551_v20, %v4144_v40  ;;  %v4475_v40 = vld [vmem:[#allocation19_spill] sm:$0xff]  ;;  %v4485_v63 = vld [vmem:[#allocation26_spill] sm:$0xff] }
 0x1ce   :  { %v2690_v21 = vmul.f32 %v4475_v40, %v4475_v40 }
 0x1cf   :  { %v2553_v18 = vadd.f32 %v4136_v59, %v2552_v49  ;;  %v2813_v47 = vadd.f32 %v2812_v25, %v2686_v45  ;;  %v4476_v59 = vld [vmem:[#allocation16_spill] sm:$0xff]  ;;  %v2700_v25 = vmul.f32 %v4485_v63, %v4485_v63 }
 0x1d0   :  { %v2691_v32 = vmul.f32 %v4476_v59, %v4476_v59 }
 0x1d1   :  { %v2814_v15 = vadd.f32 %v2813_v47, %v2687_v12  ;;  %v2554_v56 = vadd.f32 %v4473_v60, %v2553_v18  ;;  %v2701_v18 = vmul.f32 %v4186_v46, %v4186_v46 }
 0x1d3   :  { %v2555_v9 = vadd.f32 %v2554_v56, %v4474_v8  ;;  %v2815_v39 = vadd.f32 %v2814_v15, %v2688_v36  ;;  %v4486_v36 = vld [vmem:[#allocation30_spill] sm:$0xff]  ;;  %v4487_v8 = vld [vmem:[#allocation28_spill] sm:$0xff] }
 0x1d4   :  { %v2702_v56 = vmul.f32 %v4486_v36, %v4486_v36 }
 0x1d5   :  { %v2816_v34 = vadd.f32 %v2815_v39, %v2689_v29  ;;  %v2556_v10 = vadd.f32 %v2555_v9, %v4475_v40  ;;  %v2703_v9 = vmul.f32 %v4487_v8, %v4487_v8 }
 0x1d7   :  { %v2557_v52 = vadd.f32 %v4476_v59, %v2556_v10  ;;  %v2817_v28 = vadd.f32 %v2816_v34, %v2690_v21  ;;  %v4488_v34 = vld [vmem:[#allocation29_spill] sm:$0xff]  ;;  %v2705_v59 = vmul.f32 %v4198_v22, %v4198_v22 }
 0x1d8   :  { %v2704_v40 = vmul.f32 %v4488_v34, %v4488_v34 }
 0x1d9   :  { %v2818_v17 = vadd.f32 %v2817_v28, %v2691_v32  ;;  %v2558_v42 = vadd.f32 %v4477_v27, %v2557_v52  ;;  %v2706_v27 = vmul.f32 %v4204_v58, %v4204_v58 }
 0x1db   :  { %v2559_v62 = vadd.f32 %v2558_v42, %v4478_v5  ;;  %v2819_v14 = vadd.f32 %v2818_v17, %v2692_v24  ;;  %v2707_v24 = vmul.f32 %v4196_v0, %v4196_v0  ;;  %v2708_v5 = vmul.f32 %v4200_v3, %v4200_v3 }
 0x1dd   :  { %v2820_v16 = vadd.f32 %v2819_v14, %v2693_v4  ;;  %v2560_v23 = vadd.f32 %v2559_v62, %v4479_v51  ;;  %v2709_v14 = vmul.f32 %v4210_v57, %v4210_v57 }
 0x1df   :  { %v2561_v11 = vadd.f32 %v4480_v61, %v2560_v23  ;;  %v2821_v13 = vadd.f32 %v2820_v16, %v2694_v54  ;;  %v2710_v23 = vmul.f32 %v4222_v33, %v4222_v33 }
 0x1e1   :  { %v2822_v43 = vadd.f32 %v2821_v13, %v2695_v37  ;;  %v2562_v53 = vadd.f32 %v4481_v41, %v2561_v11 }
 0x1e3   :  { %v2563_v31 = vadd.f32 %v2562_v53, %v4482_v30  ;;  %v2823_v50 = vadd.f32 %v2822_v43, %v2696_v19 }
 0x1e5   :  { %v2824_v35 = vadd.f32 %v2823_v50, %v2697_v1  ;;  %v2564_v44 = vadd.f32 %v2563_v31, %v4483_v48 }
 0x1e7   :  { %v2565_v20 = vadd.f32 %v4484_v38, %v2564_v44  ;;  %v2825_v2 = vadd.f32 %v2824_v35, %v2698_v55 }
 0x1e9   :  { %v2826_v49 = vadd.f32 %v2825_v2, %v2699_v26  ;;  %v2566_v45 = vadd.f32 %v4485_v63, %v2565_v20 }
 0x1eb   :  { %v2567_v12 = vadd.f32 %v2566_v45, %v4186_v46  ;;  %v2827_v47 = vadd.f32 %v2826_v49, %v2700_v25 }
 0x1ed   :  { %v2828_v60 = vadd.f32 %v2827_v47, %v2701_v18  ;;  %v2568_v15 = vadd.f32 %v2567_v12, %v4486_v36 }
 0x1ef   :  { %v2569_v29 = vadd.f32 %v4487_v8, %v2568_v15  ;;  %v2829_v39 = vadd.f32 %v2828_v60, %v2702_v56 }
 0x1f1   :  { %v2830_v10 = vadd.f32 %v2829_v39, %v2703_v9  ;;  %v2570_v21 = vadd.f32 %v4488_v34, %v2569_v29 }
 0x1f3   :  { %v2571_v46 = vadd.f32 %v2570_v21, %v4198_v22  ;;  %v2831_v32 = vadd.f32 %v2830_v10, %v2704_v40 }
 0x1f5   :  { %v2832_v52 = vadd.f32 %v2831_v32, %v2705_v59  ;;  %v2572_v28 = vadd.f32 %v2571_v46, %v4204_v58 }
 0x1f7   :  { %v2573_v17 = vadd.f32 %v4196_v0, %v2572_v28  ;;  %v2833_v42 = vadd.f32 %v2832_v52, %v2706_v27  ;;  %v2711_v0 = vmul.f32 %v4208_v6, %v4208_v6 }
 0x1f9   :  { %v2834_v62 = vadd.f32 %v2833_v42, %v2707_v24  ;;  %v2574_v4 = vadd.f32 %v4200_v3, %v2573_v17  ;;  %v2712_v3 = vmul.f32 %v4215_v7, %v4215_v7 }
 0x1fb   :  { %v2575_v22 = vadd.f32 %v2574_v4, %v4210_v57  ;;  %v2835_v16 = vadd.f32 %v2834_v62, %v2708_v5 }
 0x1fd   :  { %v2836_v51 = vadd.f32 %v2835_v16, %v2709_v14  ;;  %v2576_v58 = vadd.f32 %v2575_v22, %v4222_v33 }
 0x1ff   :  { %v2577_v54 = vadd.f32 %v4208_v6, %v2576_v58  ;;  %v2837_v61 = vadd.f32 %v2836_v51, %v2710_v23 }
 0x201   :  { %v2578_v37 = vadd.f32 %v4215_v7, %v2577_v54  ;;  %v2838_v11 = vadd.f32 %v2837_v61, %v2711_v0 }
 0x203   :  { %v2579_v57 = vrot.slane %v2578_v37, 4  ;;  %v2839_v13 = vadd.f32 %v2838_v11, %v2712_v3 }
 0x205   :  { %v2580_v41 = vadd.f32 %v2579_v57, %v2578_v37  ;;  %v2840_v19 = vrot.slane %v2839_v13, 4 }
 0x207   :  { %v2581_v43 = vrot.slane %v2580_v41, 2  ;;  %v2841_v53 = vadd.f32 %v2840_v19, %v2839_v13 }
 0x209   :  { %v2582_v30 = vadd.f32 %v2581_v43, %v2580_v41  ;;  %v2842_v33 = vrot.slane %v2841_v53, 2 }
 0x20b   :  { %v2583_v31 = vrot.slane %v2582_v30, 1  ;;  %v2843_v1 = vadd.f32 %v2842_v33, %v2841_v53 }
 0x20d   :  { %v2844_v50 = vrot.slane %v2843_v1, 1  ;;  %v2584_v6 = vadd.f32 %v2583_v31, %v2582_v30 }
 0x20f   :  { %v2845_v35 = vadd.f32 %v2844_v50, %v2843_v1 }
 0x211   :  { %v2847_v48 = vsel %vm2846_vm0, %v2584_v6, %v2845_v35 }
 0x212   :  { %2848 = vst [vmem:[#allocation9] sm:$0x3] %v2847_v48 }
 0x213   :  { %3973 = shalt.err (!%p3970_p5)
}
 0x214   :  { %2870 = dma.vmem_to_hbm [thread:$0]  %s2868_s27, 32, %s4424_s3, [#allocation10]  }
 0x215   :  { %3986 = dma.done.wait [#allocation5], 8192  }
 0x216   :  { %3987 = vsyncadd [#allocation5], 4294959104 }
 0x217   :  { %3988 = dma.done.wait [#allocation10], 32  }
 0x218   :  { %3989 = vsyncadd [#allocation10], 4294967264 }
 0x219   :  { %2877 = vsyncpa [#allocation4], 1 }
 0x21a   :  { %2878 = vsyncpa [#allocation7], 1 }
 0x21b   :  { %2879 = vsyncpa [#allocation5], 1 }
 0x21c   :  { %2880 = vsyncpa [#allocation10], 1 }

</bundles_post_ra>
